<compile_context>
chip_gen: v5e
topology: v5e:2x2
jax: 0.10.0
libtpu: 0.0.40
codegen_flags: <defaults>
</compile_context>

<pallas_src>
import jax
import jax.numpy as jnp
from jax import lax
from jax.experimental import pallas as pl
from jax.experimental.pallas import tpu as pltpu

S = 8      # sequence length
D = 32     # input_dim
H = 32     # hidden_dim (== input_dim, see note above)
LANE = 128

ACT_ROWS = 16   # per-call activation slab: rows 0:8 = x, row 8 = system_state
OUT_ROWS = 16   # output slab: rows 0:8 = normalized output, row 8 = feedback

# row indices of the bias/vector rows inside the packed constant slab (rows 0:16)
_R_HIST, _R_KTHR, _R_BG, _R_DSB, _R_E1B, _R_E2B, _R_D1B, _R_D2B, _R_PRIO = range(9)
_V_ROWS = 16                       # vector rows padded to a sublane-aligned block

# row offsets of the weight blocks inside the constant slab (all 8-aligned)
_W_IH = _V_ROWS                    # 16  (32, 128) LSTM input->gates   (order i,f,o,g)
_W_HH = _W_IH + H                  # 48  (32, 128) LSTM hidden->gates  (order i,f,o,g)
_W_DSE1 = _W_HH + H                # 80  (32, 48)  [DynamicSynapse | anomaly-enc-1]
_W_E2 = _W_DSE1 + H                # 112 (16, 8)
_W_D1 = _W_E2 + H // 2             # 128 (8, 16)
_W_D2 = _W_D1 + H // 4             # 136 (16, 32)
_W_STAB = _W_D2 + H // 2           # 152 (32, 32)
_C_ROWS = _W_STAB + H              # 184 total constant-slab rows


def homeostatic_kernel(act_ref, c_ref, out_ref):
    f32 = jnp.float32

    # --- calculate_feedback: sin(system_state + history) * 0.1 ---
    ss = act_ref[S:S + 1, 0:H]                                            # (1, H)
    fb = jnp.sin(ss + c_ref[_R_HIST:_R_HIST + 1, 0:H]) * 0.1              # (1, H)

    # Feedback contribution to DynamicSynapse, issued early so the MXU round-trip
    # hides under the serial LSTM recurrence (replaces the old (9,H) concat).
    fb_ds = jnp.dot(fb, c_ref[_W_DSE1:_W_DSE1 + H, 0:H],
                    preferred_element_type=f32)                           # (1, H)

    # --- KanSpikingNeuron (surrogate spiking gate) ---
    # TODO(synk): KanSpikingNeuron is not defined in the source module; surrogate is
    # x * sigmoid(10 * (x - threshold)) with a per-feature threshold parameter.
    x = act_ref[0:S, 0:D]                                                 # (S, D)
    x = x * jax.nn.sigmoid(10.0 * (x - c_ref[_R_KTHR:_R_KTHR + 1, 0:D]))

    # --- LSTM (single layer, batch=1, batch_first, h0=c0=0) ---
    # Gate columns permuted to (i, f, o, g) in the wrapper.  sigmoid/tanh are taken
    # over the whole 128-lane gate vreg (unmasked EUP ops); results are lane-sliced.
    w_ih_t = c_ref[_W_IH:_W_IH + H, :]                                    # (H, 4H)
    w_hh_t = c_ref[_W_HH:_W_HH + H, :]                                    # (H, 4H)
    b_g = c_ref[_R_BG:_R_BG + 1, 0:4 * H]                                 # (1, 4H)
    xg = jnp.dot(x, w_ih_t, preferred_element_type=f32) + b_g             # (S, 4H)

    h = jnp.zeros((1, H), f32)
    c = jnp.zeros((1, H), f32)
    hs = []
    for t in range(S):   # fully unrolled recurrence; h/c stay in vregs
        gates = xg[t:t + 1, :] + jnp.dot(h, w_hh_t, preferred_element_type=f32)
        sig = jax.nn.sigmoid(gates)                                       # (1, 4H)
        tnh = jnp.tanh(gates)                                             # (1, 4H)
        c = sig[:, H:2 * H] * c + sig[:, 0:H] * tnh[:, 3 * H:4 * H]
        h = sig[:, 2 * H:3 * H] * jnp.tanh(c)
        hs.append(h)
    rnn_out = jnp.concatenate(hs, axis=0)                                 # (S, H)

    # --- DynamicSynapse(x + feedback) fused with anomaly-encoder layer 1 ---
    # TODO(synk): DynamicSynapse is not defined in the source module; surrogate is
    # a Linear(hidden_dim, hidden_dim) layer.
    y = jnp.dot(rnn_out, c_ref[_W_DSE1:_W_DSE1 + H, 0:H + H // 2],
                preferred_element_type=f32)                               # (S, 48)
    adjusted = y[:, 0:H] + fb_ds + c_ref[_R_DSB:_R_DSB + 1, 0:H]          # (S, H)
    h1 = jnp.maximum(y[:, H:H + H // 2]
                     + c_ref[_R_E1B:_R_E1B + 1, 0:H // 2], 0.0)           # (S, H/2)

    # --- remaining autoencoder layers (AnomalyDetectionModule.detect on rnn_out) ---
    h2 = jnp.maximum(
        jnp.dot(h1, c_ref[_W_E2:_W_E2 + H // 2, 0:H // 4],
                preferred_element_type=f32)
        + c_ref[_R_E2B:_R_E2B + 1, 0:H // 4], 0.0)                        # (S, H/4)
    h3 = jnp.maximum(
        jnp.dot(h2, c_ref[_W_D1:_W_D1 + H // 4, 0:H // 2],
                preferred_element_type=f32)
        + c_ref[_R_D1B:_R_D1B + 1, 0:H // 2], 0.0)                        # (S, H/2)
    recon = jax.nn.sigmoid(
        jnp.dot(h3, c_ref[_W_D2:_W_D2 + H // 2, 0:H],
                preferred_element_type=f32)
        + c_ref[_R_D2B:_R_D2B + 1, 0:H])                                  # (S, H)
    diff2 = (rnn_out - recon) ** 2
    loss = jnp.sum(diff2, axis=(0, 1), keepdims=True) * (1.0 / (S * H))   # (1, 1)
    anomaly = loss > 0.05

    # --- StabilityRegulationModule.apply, selected by the anomaly flag ---
    regulated = adjusted + 0.1 * jnp.tanh(
        jnp.dot(adjusted, c_ref[_W_STAB:_W_STAB + H, 0:H],
                preferred_element_type=f32))
    selected = jnp.where(anomaly, regulated, adjusted)

    # --- AdaptiveScheduler.allocate: F.normalize(x * priority_scale, p=2, dim=0) ---
    scaled = selected * c_ref[_R_PRIO:_R_PRIO + 1, 0:H]
    sumsq = jnp.sum(scaled * scaled, axis=0, keepdims=True)               # (1, H)
    # torch: x / max(||x||, 1e-12)  ==  x * rsqrt(max(sumsq, 1e-24))
    norm = scaled * lax.rsqrt(jnp.maximum(sumsq, 1e-24))                  # (S, H)

    # --- single lane-dense output slab: one unmasked full-vreg store ---
    out_pad = jnp.concatenate([norm, jnp.zeros((S, LANE - H), f32)], axis=1)
    fb_pad = jnp.concatenate([fb, jnp.zeros((1, LANE - H), f32)], axis=1)
    tail = jnp.zeros((OUT_ROWS - S - 1, LANE), f32)
    out_ref[...] = jnp.concatenate([out_pad, fb_pad, tail], axis=0)       # (16, 128)

    # TODO(synk): the torch module rebinds self.history = tanh(history + adjusted_output)
    # (a stateful, shape-changing parameter update); not reproduced here.


def _reorder_gates(w):
    """Permute torch LSTM gate blocks (i, f, g, o) -> (i, f, o, g) along axis 0."""
    i, f, g, o = jnp.split(w, 4, axis=0)
    return jnp.concatenate([i, f, o, g], axis=0)


def _row(v):
    """Pack a 1-D vector into one lane-padded (1, 128) row."""
    return jnp.pad(v, (0, LANE - v.shape[0])).reshape(1, LANE)


def _wblock(w):
    """Lane-pad a (K, N) weight block to (K, 128)."""
    return jnp.pad(w, ((0, 0), (0, LANE - w.shape[1])))


def init_params(key):
    keys = jax.random.split(key, 16)
    s = 1.0 / float(H) ** 0.5

    def lin(kw, kb, fan_in, fan_out):
        bound = 1.0 / float(fan_in) ** 0.5
        w = jax.random.uniform(kw, (fan_out, fan_in), jnp.float32, -bound, bound)
        b = jax.random.uniform(kb, (fan_out,), jnp.float32, -bound, bound)
        return w.T, b                                       # (fan_in, fan_out), (fan_out,)

    history = jnp.zeros((H,), jnp.float32)                  # nn.Parameter(zeros(hidden_dim))
    kan_thr = jnp.full((D,), 0.5, jnp.float32)              # surrogate KAN threshold

    w_ih = jax.random.uniform(keys[0], (4 * H, H), jnp.float32, -s, s)
    w_hh = jax.random.uniform(keys[1], (4 * H, H), jnp.float32, -s, s)
    b_ih = jax.random.uniform(keys[2], (4 * H,), jnp.float32, -s, s)
    b_hh = jax.random.uniform(keys[3], (4 * H,), jnp.float32, -s, s)
    w_ih_t = _reorder_gates(w_ih).T                         # (H, 4H), gate order i,f,o,g
    w_hh_t = _reorder_gates(w_hh).T                         # (H, 4H)
    b_g = _reorder_gates(b_ih + b_hh)                       # (4H,)

    ds_w_t, ds_b = lin(keys[4], keys[5], H, H)              # DynamicSynapse surrogate
    e1w_t, e1b = lin(keys[6], keys[7], H, H // 2)           # anomaly encoder
    e2w_t, e2b = lin(keys[8], keys[9], H // 2, H // 4)
    d1w_t, d1b = lin(keys[10], keys[11], H // 4, H // 2)    # anomaly decoder
    d2w_t, d2b = lin(keys[12], keys[13], H // 2, H)
    stab_w = jax.random.normal(keys[14], (H, H), jnp.float32) * 0.01
    prio = jnp.ones((H,), jnp.float32)                      # AdaptiveScheduler.priority_scale

    # --- ONE packed constant slab (cuts per-call constant DMAs to 1) ---
    vec = jnp.concatenate([
        _row(history), _row(kan_thr), _row(b_g), _row(ds_b),
        _row(e1b), _row(e2b), _row(d1b), _row(d2b), _row(prio),
        jnp.zeros((_V_ROWS - 9, LANE), jnp.float32)], axis=0)             # (16, 128)

    c_slab = jnp.concatenate([
        vec,                                                  # rows   0: 16
        _wblock(w_ih_t),                                      # rows  16: 48
        _wblock(w_hh_t),                                      # rows  48: 80
        _wblock(jnp.concatenate([ds_w_t, e1w_t], axis=1)),    # rows  80:112 (cols 0:48)
        _wblock(e2w_t),                                       # rows 112:128
        _wblock(d1w_t),                                       # rows 128:136
        _wblock(d2w_t),                                       # rows 136:152
        _wblock(stab_w),                                      # rows 152:184
    ], axis=0)                                                # (184, 128)
    assert c_slab.shape == (_C_ROWS, LANE)

    return {"c": c_slab}


def homeostatic_forward(x, system_state, packed):
    vmem = pl.BlockSpec(memory_space=pltpu.MemorySpace.VMEM)

    # pack x + system_state into one lane/sublane-dense activation slab (1 input DMA)
    x_pad = jnp.pad(x, ((0, 0), (0, LANE - D)))                           # (8, 128)
    ss_pad = jnp.pad(system_state.reshape(1, H), ((0, 0), (0, LANE - H))) # (1, 128)
    act = jnp.concatenate(
        [x_pad, ss_pad, jnp.zeros((ACT_ROWS - S - 1, LANE), jnp.float32)], axis=0)

    out = pl.pallas_call(
        homeostatic_kernel,
        out_shape=jax.ShapeDtypeStruct((OUT_ROWS, LANE), jnp.float32),
        in_specs=[vmem, vmem],
        out_specs=vmem,
    )(act, packed["c"])

    adjusted_output = out[0:S, 0:H]
    feedback_signal = out[S, 0:H]
    return adjusted_output, feedback_signal


if __name__ == "__main__":
    key = jax.random.PRNGKey(0)
    kx, ks, kp = jax.random.split(key, 3)
    x = jax.random.normal(kx, (S, D), jnp.float32)
    system_state = jax.random.normal(ks, (H,), jnp.float32)
    params = init_params(kp)

    adjusted_output, feedback_signal = homeostatic_forward(x, system_state, params)
    jax.block_until_ready((adjusted_output, feedback_signal))
    assert adjusted_output.shape == (S, H)
    assert feedback_signal.shape == (H,)
    print("KERNEL_OK")
</pallas_src>

<mosaic_0001>
module attributes {stable_mosaic.version = 11 : i64} {
  func.func @homeostatic_kernel(%arg0: memref<16x128xf32, #tpu.memory_space<vmem>>, %arg1: memref<184x128xf32, #tpu.memory_space<vmem>>, %arg2: memref<16x128xf32, #tpu.memory_space<vmem>>) attributes {dimension_semantics = [], scalar_prefetch = 0 : i64, scratch_operands = 0 : i64, tpu.core_type = #tpu.core_type<tc>} {
    %c8 = arith.constant 8 : index
    %c0 = arith.constant 0 : index
    %0 = vector.load %arg0[%c8, %c0] : memref<16x128xf32, #tpu.memory_space<vmem>>, vector<1x32xf32>
    %c0_0 = arith.constant 0 : index
    %c0_1 = arith.constant 0 : index
    %1 = vector.load %arg1[%c0_0, %c0_1] : memref<184x128xf32, #tpu.memory_space<vmem>>, vector<1x32xf32>
    %2 = arith.addf %0, %1 : vector<1x32xf32>
    %3 = math.sin %2 : vector<1x32xf32>
    %cst = arith.constant 1.000000e-01 : f32
    %4 = vector.broadcast %cst : f32 to vector<1x32xf32>
    %5 = arith.mulf %3, %4 : vector<1x32xf32>
    %c80 = arith.constant 80 : index
    %c0_2 = arith.constant 0 : index
    %6 = vector.load %arg1[%c80, %c0_2] : memref<184x128xf32, #tpu.memory_space<vmem>>, vector<32x32xf32>
    %cst_3 = arith.constant dense<0.000000e+00> : vector<1x32xf32>
    %7 = tpu.matmul %5, %6, %cst_3 {dimension_numbers = #tpu.dot_dimension_numbers<[1], [0], [0], [1], [0, 0, 1, 1], [], []>} : vector<1x32xf32>, vector<32x32xf32>, vector<1x32xf32> -> vector<1x32xf32>
    %c0_4 = arith.constant 0 : index
    %c0_5 = arith.constant 0 : index
    %8 = vector.load %arg0[%c0_4, %c0_5] : memref<16x128xf32, #tpu.memory_space<vmem>>, vector<8x32xf32>
    %c1 = arith.constant 1 : index
    %c0_6 = arith.constant 0 : index
    %9 = vector.load %arg1[%c1, %c0_6] : memref<184x128xf32, #tpu.memory_space<vmem>>, vector<1x32xf32>
    %10 = vector.broadcast %9 : vector<1x32xf32> to vector<8x32xf32>
    %11 = arith.subf %8, %10 : vector<8x32xf32>
    %cst_7 = arith.constant 1.000000e+01 : f32
    %12 = vector.broadcast %cst_7 : f32 to vector<8x32xf32>
    %13 = arith.mulf %12, %11 : vector<8x32xf32>
    %14 = arith.negf %13 : vector<8x32xf32>
    %15 = math.exp %14 : vector<8x32xf32>
    %cst_8 = arith.constant 1.000000e+00 : f32
    %16 = vector.broadcast %cst_8 : f32 to vector<8x32xf32>
    %17 = arith.addf %16, %15 : vector<8x32xf32>
    %18 = arith.divf %16, %17 : vector<8x32xf32>
    %19 = arith.mulf %8, %18 : vector<8x32xf32>
    %c16 = arith.constant 16 : index
    %c0_9 = arith.constant 0 : index
    %20 = vector.load %arg1[%c16, %c0_9] : memref<184x128xf32, #tpu.memory_space<vmem>>, vector<32x128xf32>
    %c48 = arith.constant 48 : index
    %c0_10 = arith.constant 0 : index
    %21 = vector.load %arg1[%c48, %c0_10] : memref<184x128xf32, #tpu.memory_space<vmem>>, vector<32x128xf32>
    %c2 = arith.constant 2 : index
    %c0_11 = arith.constant 0 : index
    %22 = vector.load %arg1[%c2, %c0_11] : memref<184x128xf32, #tpu.memory_space<vmem>>, vector<1x128xf32>
    %cst_12 = arith.constant dense<0.000000e+00> : vector<8x128xf32>
    %23 = tpu.matmul %19, %20, %cst_12 {dimension_numbers = #tpu.dot_dimension_numbers<[1], [0], [0], [1], [0, 0, 1, 1], [], []>} : vector<8x32xf32>, vector<32x128xf32>, vector<8x128xf32> -> vector<8x128xf32>
    %24 = vector.broadcast %22 : vector<1x128xf32> to vector<8x128xf32>
    %25 = arith.addf %23, %24 : vector<8x128xf32>
    %cst_13 = arith.constant 0.000000e+00 : f32
    %26 = vector.broadcast %cst_13 : f32 to vector<1x32xf32>
    %cst_14 = arith.constant 0.000000e+00 : f32
    %27 = vector.broadcast %cst_14 : f32 to vector<1x32xf32>
    %28 = vector.extract_strided_slice %25 {offsets = [0, 0], sizes = [1, 128], strides = [1, 1]} : vector<8x128xf32> to vector<1x128xf32>
    %cst_15 = arith.constant dense<0.000000e+00> : vector<1x128xf32>
    %29 = tpu.matmul %26, %21, %cst_15 {dimension_numbers = #tpu.dot_dimension_numbers<[1], [0], [0], [1], [0, 0, 1, 1], [], []>} : vector<1x32xf32>, vector<32x128xf32>, vector<1x128xf32> -> vector<1x128xf32>
    %30 = arith.addf %28, %29 : vector<1x128xf32>
    %31 = arith.negf %30 : vector<1x128xf32>
    %32 = math.exp %31 : vector<1x128xf32>
    %cst_16 = arith.constant 1.000000e+00 : f32
    %33 = vector.broadcast %cst_16 : f32 to vector<1x128xf32>
    %34 = arith.addf %33, %32 : vector<1x128xf32>
    %35 = arith.divf %33, %34 : vector<1x128xf32>
    %36 = math.tanh %30 : vector<1x128xf32>
    %37 = vector.extract_strided_slice %35 {offsets = [0, 32], sizes = [1, 32], strides = [1, 1]} : vector<1x128xf32> to vector<1x32xf32>
    %38 = arith.mulf %37, %27 : vector<1x32xf32>
    %39 = vector.extract_strided_slice %35 {offsets = [0, 0], sizes = [1, 32], strides = [1, 1]} : vector<1x128xf32> to vector<1x32xf32>
    %40 = vector.extract_strided_slice %36 {offsets = [0, 96], sizes = [1, 32], strides = [1, 1]} : vector<1x128xf32> to vector<1x32xf32>
    %41 = arith.mulf %39, %40 : vector<1x32xf32>
    %42 = arith.addf %38, %41 : vector<1x32xf32>
    %43 = vector.extract_strided_slice %35 {offsets = [0, 64], sizes = [1, 32], strides = [1, 1]} : vector<1x128xf32> to vector<1x32xf32>
    %44 = math.tanh %42 : vector<1x32xf32>
    %45 = arith.mulf %43, %44 : vector<1x32xf32>
    %46 = vector.extract_strided_slice %25 {offsets = [1, 0], sizes = [1, 128], strides = [1, 1]} : vector<8x128xf32> to vector<1x128xf32>
    %cst_17 = arith.constant dense<0.000000e+00> : vector<1x128xf32>
    %47 = tpu.matmul %45, %21, %cst_17 {dimension_numbers = #tpu.dot_dimension_numbers<[1], [0], [0], [1], [0, 0, 1, 1], [], []>} : vector<1x32xf32>, vector<32x128xf32>, vector<1x128xf32> -> vector<1x128xf32>
    %48 = arith.addf %46, %47 : vector<1x128xf32>
    %49 = arith.negf %48 : vector<1x128xf32>
    %50 = math.exp %49 : vector<1x128xf32>
    %cst_18 = arith.constant 1.000000e+00 : f32
    %51 = vector.broadcast %cst_18 : f32 to vector<1x128xf32>
    %52 = arith.addf %51, %50 : vector<1x128xf32>
    %53 = arith.divf %51, %52 : vector<1x128xf32>
    %54 = math.tanh %48 : vector<1x128xf32>
    %55 = vector.extract_strided_slice %53 {offsets = [0, 32], sizes = [1, 32], strides = [1, 1]} : vector<1x128xf32> to vector<1x32xf32>
    %56 = arith.mulf %55, %42 : vector<1x32xf32>
    %57 = vector.extract_strided_slice %53 {offsets = [0, 0], sizes = [1, 32], strides = [1, 1]} : vector<1x128xf32> to vector<1x32xf32>
    %58 = vector.extract_strided_slice %54 {offsets = [0, 96], sizes = [1, 32], strides = [1, 1]} : vector<1x128xf32> to vector<1x32xf32>
    %59 = arith.mulf %57, %58 : vector<1x32xf32>
    %60 = arith.addf %56, %59 : vector<1x32xf32>
    %61 = vector.extract_strided_slice %53 {offsets = [0, 64], sizes = [1, 32], strides = [1, 1]} : vector<1x128xf32> to vector<1x32xf32>
    %62 = math.tanh %60 : vector<1x32xf32>
    %63 = arith.mulf %61, %62 : vector<1x32xf32>
    %64 = vector.extract_strided_slice %25 {offsets = [2, 0], sizes = [1, 128], strides = [1, 1]} : vector<8x128xf32> to vector<1x128xf32>
    %cst_19 = arith.constant dense<0.000000e+00> : vector<1x128xf32>
    %65 = tpu.matmul %63, %21, %cst_19 {dimension_numbers = #tpu.dot_dimension_numbers<[1], [0], [0], [1], [0, 0, 1, 1], [], []>} : vector<1x32xf32>, vector<32x128xf32>, vector<1x128xf32> -> vector<1x128xf32>
    %66 = arith.addf %64, %65 : vector<1x128xf32>
    %67 = arith.negf %66 : vector<1x128xf32>
    %68 = math.exp %67 : vector<1x128xf32>
    %cst_20 = arith.constant 1.000000e+00 : f32
    %69 = vector.broadcast %cst_20 : f32 to vector<1x128xf32>
    %70 = arith.addf %69, %68 : vector<1x128xf32>
    %71 = arith.divf %69, %70 : vector<1x128xf32>
    %72 = math.tanh %66 : vector<1x128xf32>
    %73 = vector.extract_strided_slice %71 {offsets = [0, 32], sizes = [1, 32], strides = [1, 1]} : vector<1x128xf32> to vector<1x32xf32>
    %74 = arith.mulf %73, %60 : vector<1x32xf32>
    %75 = vector.extract_strided_slice %71 {offsets = [0, 0], sizes = [1, 32], strides = [1, 1]} : vector<1x128xf32> to vector<1x32xf32>
    %76 = vector.extract_strided_slice %72 {offsets = [0, 96], sizes = [1, 32], strides = [1, 1]} : vector<1x128xf32> to vector<1x32xf32>
    %77 = arith.mulf %75, %76 : vector<1x32xf32>
    %78 = arith.addf %74, %77 : vector<1x32xf32>
    %79 = vector.extract_strided_slice %71 {offsets = [0, 64], sizes = [1, 32], strides = [1, 1]} : vector<1x128xf32> to vector<1x32xf32>
    %80 = math.tanh %78 : vector<1x32xf32>
    %81 = arith.mulf %79, %80 : vector<1x32xf32>
    %82 = vector.extract_strided_slice %25 {offsets = [3, 0], sizes = [1, 128], strides = [1, 1]} : vector<8x128xf32> to vector<1x128xf32>
    %cst_21 = arith.constant dense<0.000000e+00> : vector<1x128xf32>
    %83 = tpu.matmul %81, %21, %cst_21 {dimension_numbers = #tpu.dot_dimension_numbers<[1], [0], [0], [1], [0, 0, 1, 1], [], []>} : vector<1x32xf32>, vector<32x128xf32>, vector<1x128xf32> -> vector<1x128xf32>
    %84 = arith.addf %82, %83 : vector<1x128xf32>
    %85 = arith.negf %84 : vector<1x128xf32>
    %86 = math.exp %85 : vector<1x128xf32>
    %cst_22 = arith.constant 1.000000e+00 : f32
    %87 = vector.broadcast %cst_22 : f32 to vector<1x128xf32>
    %88 = arith.addf %87, %86 : vector<1x128xf32>
    %89 = arith.divf %87, %88 : vector<1x128xf32>
    %90 = math.tanh %84 : vector<1x128xf32>
    %91 = vector.extract_strided_slice %89 {offsets = [0, 32], sizes = [1, 32], strides = [1, 1]} : vector<1x128xf32> to vector<1x32xf32>
    %92 = arith.mulf %91, %78 : vector<1x32xf32>
    %93 = vector.extract_strided_slice %89 {offsets = [0, 0], sizes = [1, 32], strides = [1, 1]} : vector<1x128xf32> to vector<1x32xf32>
    %94 = vector.extract_strided_slice %90 {offsets = [0, 96], sizes = [1, 32], strides = [1, 1]} : vector<1x128xf32> to vector<1x32xf32>
    %95 = arith.mulf %93, %94 : vector<1x32xf32>
    %96 = arith.addf %92, %95 : vector<1x32xf32>
    %97 = vector.extract_strided_slice %89 {offsets = [0, 64], sizes = [1, 32], strides = [1, 1]} : vector<1x128xf32> to vector<1x32xf32>
    %98 = math.tanh %96 : vector<1x32xf32>
    %99 = arith.mulf %97, %98 : vector<1x32xf32>
    %100 = vector.extract_strided_slice %25 {offsets = [4, 0], sizes = [1, 128], strides = [1, 1]} : vector<8x128xf32> to vector<1x128xf32>
    %cst_23 = arith.constant dense<0.000000e+00> : vector<1x128xf32>
    %101 = tpu.matmul %99, %21, %cst_23 {dimension_numbers = #tpu.dot_dimension_numbers<[1], [0], [0], [1], [0, 0, 1, 1], [], []>} : vector<1x32xf32>, vector<32x128xf32>, vector<1x128xf32> -> vector<1x128xf32>
    %102 = arith.addf %100, %101 : vector<1x128xf32>
    %103 = arith.negf %102 : vector<1x128xf32>
    %104 = math.exp %103 : vector<1x128xf32>
    %cst_24 = arith.constant 1.000000e+00 : f32
    %105 = vector.broadcast %cst_24 : f32 to vector<1x128xf32>
    %106 = arith.addf %105, %104 : vector<1x128xf32>
    %107 = arith.divf %105, %106 : vector<1x128xf32>
    %108 = math.tanh %102 : vector<1x128xf32>
    %109 = vector.extract_strided_slice %107 {offsets = [0, 32], sizes = [1, 32], strides = [1, 1]} : vector<1x128xf32> to vector<1x32xf32>
    %110 = arith.mulf %109, %96 : vector<1x32xf32>
    %111 = vector.extract_strided_slice %107 {offsets = [0, 0], sizes = [1, 32], strides = [1, 1]} : vector<1x128xf32> to vector<1x32xf32>
    %112 = vector.extract_strided_slice %108 {offsets = [0, 96], sizes = [1, 32], strides = [1, 1]} : vector<1x128xf32> to vector<1x32xf32>
    %113 = arith.mulf %111, %112 : vector<1x32xf32>
    %114 = arith.addf %110, %113 : vector<1x32xf32>
    %115 = vector.extract_strided_slice %107 {offsets = [0, 64], sizes = [1, 32], strides = [1, 1]} : vector<1x128xf32> to vector<1x32xf32>
    %116 = math.tanh %114 : vector<1x32xf32>
    %117 = arith.mulf %115, %116 : vector<1x32xf32>
    %118 = vector.extract_strided_slice %25 {offsets = [5, 0], sizes = [1, 128], strides = [1, 1]} : vector<8x128xf32> to vector<1x128xf32>
    %cst_25 = arith.constant dense<0.000000e+00> : vector<1x128xf32>
    %119 = tpu.matmul %117, %21, %cst_25 {dimension_numbers = #tpu.dot_dimension_numbers<[1], [0], [0], [1], [0, 0, 1, 1], [], []>} : vector<1x32xf32>, vector<32x128xf32>, vector<1x128xf32> -> vector<1x128xf32>
    %120 = arith.addf %118, %119 : vector<1x128xf32>
    %121 = arith.negf %120 : vector<1x128xf32>
    %122 = math.exp %121 : vector<1x128xf32>
    %cst_26 = arith.constant 1.000000e+00 : f32
    %123 = vector.broadcast %cst_26 : f32 to vector<1x128xf32>
    %124 = arith.addf %123, %122 : vector<1x128xf32>
    %125 = arith.divf %123, %124 : vector<1x128xf32>
    %126 = math.tanh %120 : vector<1x128xf32>
    %127 = vector.extract_strided_slice %125 {offsets = [0, 32], sizes = [1, 32], strides = [1, 1]} : vector<1x128xf32> to vector<1x32xf32>
    %128 = arith.mulf %127, %114 : vector<1x32xf32>
    %129 = vector.extract_strided_slice %125 {offsets = [0, 0], sizes = [1, 32], strides = [1, 1]} : vector<1x128xf32> to vector<1x32xf32>
    %130 = vector.extract_strided_slice %126 {offsets = [0, 96], sizes = [1, 32], strides = [1, 1]} : vector<1x128xf32> to vector<1x32xf32>
    %131 = arith.mulf %129, %130 : vector<1x32xf32>
    %132 = arith.addf %128, %131 : vector<1x32xf32>
    %133 = vector.extract_strided_slice %125 {offsets = [0, 64], sizes = [1, 32], strides = [1, 1]} : vector<1x128xf32> to vector<1x32xf32>
    %134 = math.tanh %132 : vector<1x32xf32>
    %135 = arith.mulf %133, %134 : vector<1x32xf32>
    %136 = vector.extract_strided_slice %25 {offsets = [6, 0], sizes = [1, 128], strides = [1, 1]} : vector<8x128xf32> to vector<1x128xf32>
    %cst_27 = arith.constant dense<0.000000e+00> : vector<1x128xf32>
    %137 = tpu.matmul %135, %21, %cst_27 {dimension_numbers = #tpu.dot_dimension_numbers<[1], [0], [0], [1], [0, 0, 1, 1], [], []>} : vector<1x32xf32>, vector<32x128xf32>, vector<1x128xf32> -> vector<1x128xf32>
    %138 = arith.addf %136, %137 : vector<1x128xf32>
    %139 = arith.negf %138 : vector<1x128xf32>
    %140 = math.exp %139 : vector<1x128xf32>
    %cst_28 = arith.constant 1.000000e+00 : f32
    %141 = vector.broadcast %cst_28 : f32 to vector<1x128xf32>
    %142 = arith.addf %141, %140 : vector<1x128xf32>
    %143 = arith.divf %141, %142 : vector<1x128xf32>
    %144 = math.tanh %138 : vector<1x128xf32>
    %145 = vector.extract_strided_slice %143 {offsets = [0, 32], sizes = [1, 32], strides = [1, 1]} : vector<1x128xf32> to vector<1x32xf32>
    %146 = arith.mulf %145, %132 : vector<1x32xf32>
    %147 = vector.extract_strided_slice %143 {offsets = [0, 0], sizes = [1, 32], strides = [1, 1]} : vector<1x128xf32> to vector<1x32xf32>
    %148 = vector.extract_strided_slice %144 {offsets = [0, 96], sizes = [1, 32], strides = [1, 1]} : vector<1x128xf32> to vector<1x32xf32>
    %149 = arith.mulf %147, %148 : vector<1x32xf32>
    %150 = arith.addf %146, %149 : vector<1x32xf32>
    %151 = vector.extract_strided_slice %143 {offsets = [0, 64], sizes = [1, 32], strides = [1, 1]} : vector<1x128xf32> to vector<1x32xf32>
    %152 = math.tanh %150 : vector<1x32xf32>
    %153 = arith.mulf %151, %152 : vector<1x32xf32>
    %154 = vector.extract_strided_slice %25 {offsets = [7, 0], sizes = [1, 128], strides = [1, 1]} : vector<8x128xf32> to vector<1x128xf32>
    %cst_29 = arith.constant dense<0.000000e+00> : vector<1x128xf32>
    %155 = tpu.matmul %153, %21, %cst_29 {dimension_numbers = #tpu.dot_dimension_numbers<[1], [0], [0], [1], [0, 0, 1, 1], [], []>} : vector<1x32xf32>, vector<32x128xf32>, vector<1x128xf32> -> vector<1x128xf32>
    %156 = arith.addf %154, %155 : vector<1x128xf32>
    %157 = arith.negf %156 : vector<1x128xf32>
    %158 = math.exp %157 : vector<1x128xf32>
    %cst_30 = arith.constant 1.000000e+00 : f32
    %159 = vector.broadcast %cst_30 : f32 to vector<1x128xf32>
    %160 = arith.addf %159, %158 : vector<1x128xf32>
    %161 = arith.divf %159, %160 : vector<1x128xf32>
    %162 = math.tanh %156 : vector<1x128xf32>
    %163 = vector.extract_strided_slice %161 {offsets = [0, 32], sizes = [1, 32], strides = [1, 1]} : vector<1x128xf32> to vector<1x32xf32>
    %164 = arith.mulf %163, %150 : vector<1x32xf32>
    %165 = vector.extract_strided_slice %161 {offsets = [0, 0], sizes = [1, 32], strides = [1, 1]} : vector<1x128xf32> to vector<1x32xf32>
    %166 = vector.extract_strided_slice %162 {offsets = [0, 96], sizes = [1, 32], strides = [1, 1]} : vector<1x128xf32> to vector<1x32xf32>
    %167 = arith.mulf %165, %166 : vector<1x32xf32>
    %168 = arith.addf %164, %167 : vector<1x32xf32>
    %169 = vector.extract_strided_slice %161 {offsets = [0, 64], sizes = [1, 32], strides = [1, 1]} : vector<1x128xf32> to vector<1x32xf32>
    %170 = math.tanh %168 : vector<1x32xf32>
    %171 = arith.mulf %169, %170 : vector<1x32xf32>
    %172 = tpu.concatenate %45, %63, %81, %99, %117, %135, %153, %171 in 0 : vector<1x32xf32>, vector<1x32xf32>, vector<1x32xf32>, vector<1x32xf32>, vector<1x32xf32>, vector<1x32xf32>, vector<1x32xf32>, vector<1x32xf32> -> vector<8x32xf32>
    %c80_31 = arith.constant 80 : index
    %c0_32 = arith.constant 0 : index
    %173 = vector.load %arg1[%c80_31, %c0_32] : memref<184x128xf32, #tpu.memory_space<vmem>>, vector<32x48xf32>
    %cst_33 = arith.constant dense<0.000000e+00> : vector<8x48xf32>
    %174 = tpu.matmul %172, %173, %cst_33 {dimension_numbers = #tpu.dot_dimension_numbers<[1], [0], [0], [1], [0, 0, 1, 1], [], []>} : vector<8x32xf32>, vector<32x48xf32>, vector<8x48xf32> -> vector<8x48xf32>
    %175 = vector.extract_strided_slice %174 {offsets = [0, 0], sizes = [8, 32], strides = [1, 1]} : vector<8x48xf32> to vector<8x32xf32>
    %176 = vector.broadcast %7 : vector<1x32xf32> to vector<8x32xf32>
    %177 = arith.addf %175, %176 : vector<8x32xf32>
    %c3 = arith.constant 3 : index
    %c0_34 = arith.constant 0 : index
    %178 = vector.load %arg1[%c3, %c0_34] : memref<184x128xf32, #tpu.memory_space<vmem>>, vector<1x32xf32>
    %179 = vector.broadcast %178 : vector<1x32xf32> to vector<8x32xf32>
    %180 = arith.addf %177, %179 : vector<8x32xf32>
    %181 = vector.extract_strided_slice %174 {offsets = [0, 32], sizes = [8, 16], strides = [1, 1]} : vector<8x48xf32> to vector<8x16xf32>
    %c4 = arith.constant 4 : index
    %c0_35 = arith.constant 0 : index
    %182 = vector.load %arg1[%c4, %c0_35] : memref<184x128xf32, #tpu.memory_space<vmem>>, vector<1x16xf32>
    %183 = vector.broadcast %182 : vector<1x16xf32> to vector<8x16xf32>
    %184 = arith.addf %181, %183 : vector<8x16xf32>
    %cst_36 = arith.constant 0.000000e+00 : f32
    %185 = vector.broadcast %cst_36 : f32 to vector<8x16xf32>
    %186 = arith.maximumf %184, %185 : vector<8x16xf32>
    %c112 = arith.constant 112 : index
    %c0_37 = arith.constant 0 : index
    %187 = vector.load %arg1[%c112, %c0_37] : memref<184x128xf32, #tpu.memory_space<vmem>>, vector<16x8xf32>
    %cst_38 = arith.constant dense<0.000000e+00> : vector<8x8xf32>
    %188 = tpu.matmul %186, %187, %cst_38 {dimension_numbers = #tpu.dot_dimension_numbers<[1], [0], [0], [1], [0, 0, 1, 1], [], []>} : vector<8x16xf32>, vector<16x8xf32>, vector<8x8xf32> -> vector<8x8xf32>
    %c5 = arith.constant 5 : index
    %c0_39 = arith.constant 0 : index
    %189 = vector.load %arg1[%c5, %c0_39] : memref<184x128xf32, #tpu.memory_space<vmem>>, vector<1x8xf32>
    %190 = vector.broadcast %189 : vector<1x8xf32> to vector<8x8xf32>
    %191 = arith.addf %188, %190 : vector<8x8xf32>
    %cst_40 = arith.constant 0.000000e+00 : f32
    %192 = vector.broadcast %cst_40 : f32 to vector<8x8xf32>
    %193 = arith.maximumf %191, %192 : vector<8x8xf32>
    %c128 = arith.constant 128 : index
    %c0_41 = arith.constant 0 : index
    %194 = vector.load %arg1[%c128, %c0_41] : memref<184x128xf32, #tpu.memory_space<vmem>>, vector<8x16xf32>
    %cst_42 = arith.constant dense<0.000000e+00> : vector<8x16xf32>
    %195 = tpu.matmul %193, %194, %cst_42 {dimension_numbers = #tpu.dot_dimension_numbers<[1], [0], [0], [1], [0, 0, 1, 1], [], []>} : vector<8x8xf32>, vector<8x16xf32>, vector<8x16xf32> -> vector<8x16xf32>
    %c6 = arith.constant 6 : index
    %c0_43 = arith.constant 0 : index
    %196 = vector.load %arg1[%c6, %c0_43] : memref<184x128xf32, #tpu.memory_space<vmem>>, vector<1x16xf32>
    %197 = vector.broadcast %196 : vector<1x16xf32> to vector<8x16xf32>
    %198 = arith.addf %195, %197 : vector<8x16xf32>
    %cst_44 = arith.constant 0.000000e+00 : f32
    %199 = vector.broadcast %cst_44 : f32 to vector<8x16xf32>
    %200 = arith.maximumf %198, %199 : vector<8x16xf32>
    %c136 = arith.constant 136 : index
    %c0_45 = arith.constant 0 : index
    %201 = vector.load %arg1[%c136, %c0_45] : memref<184x128xf32, #tpu.memory_space<vmem>>, vector<16x32xf32>
    %cst_46 = arith.constant dense<0.000000e+00> : vector<8x32xf32>
    %202 = tpu.matmul %200, %201, %cst_46 {dimension_numbers = #tpu.dot_dimension_numbers<[1], [0], [0], [1], [0, 0, 1, 1], [], []>} : vector<8x16xf32>, vector<16x32xf32>, vector<8x32xf32> -> vector<8x32xf32>
    %c7 = arith.constant 7 : index
    %c0_47 = arith.constant 0 : index
    %203 = vector.load %arg1[%c7, %c0_47] : memref<184x128xf32, #tpu.memory_space<vmem>>, vector<1x32xf32>
    %204 = vector.broadcast %203 : vector<1x32xf32> to vector<8x32xf32>
    %205 = arith.addf %202, %204 : vector<8x32xf32>
    %206 = arith.negf %205 : vector<8x32xf32>
    %207 = math.exp %206 : vector<8x32xf32>
    %cst_48 = arith.constant 1.000000e+00 : f32
    %208 = vector.broadcast %cst_48 : f32 to vector<8x32xf32>
    %209 = arith.addf %208, %207 : vector<8x32xf32>
    %210 = arith.divf %208, %209 : vector<8x32xf32>
    %211 = arith.subf %172, %210 : vector<8x32xf32>
    %212 = arith.mulf %211, %211 : vector<8x32xf32>
    %213 = vector.shape_cast %212 : vector<8x32xf32> to vector<1x8x32xf32>
    %cst_49 = arith.constant dense<0.000000e+00> : vector<1xf32>
    %214 = vector.multi_reduction <add>, %213, %cst_49 [1, 2] : vector<1x8x32xf32> to vector<1xf32>
    %215 = vector.shape_cast %214 : vector<1xf32> to vector<1x1x1xf32>
    %216 = vector.extract %215[0, 0, 0] : f32 from vector<1x1x1xf32>
    %217 = vector.broadcast %216 : f32 to vector<1x1xf32>
    %cst_50 = arith.constant 3.906250e-03 : f32
    %218 = vector.broadcast %cst_50 : f32 to vector<1x1xf32>
    %219 = arith.mulf %217, %218 : vector<1x1xf32>
    %cst_51 = arith.constant 5.000000e-02 : f32
    %220 = vector.broadcast %cst_51 : f32 to vector<1x1xf32>
    %221 = arith.cmpf ogt, %219, %220 : vector<1x1xf32>
    %c152 = arith.constant 152 : index
    %c0_52 = arith.constant 0 : index
    %222 = vector.load %arg1[%c152, %c0_52] : memref<184x128xf32, #tpu.memory_space<vmem>>, vector<32x32xf32>
    %cst_53 = arith.constant dense<0.000000e+00> : vector<8x32xf32>
    %223 = tpu.matmul %180, %222, %cst_53 {dimension_numbers = #tpu.dot_dimension_numbers<[1], [0], [0], [1], [0, 0, 1, 1], [], []>} : vector<8x32xf32>, vector<32x32xf32>, vector<8x32xf32> -> vector<8x32xf32>
    %224 = math.tanh %223 : vector<8x32xf32>
    %cst_54 = arith.constant 1.000000e-01 : f32
    %225 = vector.broadcast %cst_54 : f32 to vector<8x32xf32>
    %226 = arith.mulf %225, %224 : vector<8x32xf32>
    %227 = arith.addf %180, %226 : vector<8x32xf32>
    %228 = vector.shape_cast %221 : vector<1x1xi1> to vector<1x1xi1>
    %229 = vector.broadcast %228 : vector<1x1xi1> to vector<8x32xi1>
    %230 = arith.select %229, %227, %180 : vector<8x32xi1>, vector<8x32xf32>
    %c8_55 = arith.constant 8 : index
    %c0_56 = arith.constant 0 : index
    %231 = vector.load %arg1[%c8_55, %c0_56] : memref<184x128xf32, #tpu.memory_space<vmem>>, vector<1x32xf32>
    %232 = vector.broadcast %231 : vector<1x32xf32> to vector<8x32xf32>
    %233 = arith.mulf %230, %232 : vector<8x32xf32>
    %234 = arith.mulf %233, %233 : vector<8x32xf32>
    %cst_57 = arith.constant dense<0.000000e+00> : vector<32xf32>
    %235 = vector.multi_reduction <add>, %234, %cst_57 [0] : vector<8x32xf32> to vector<32xf32>
    %236 = vector.shape_cast %235 : vector<32xf32> to vector<1x32xf32>
    %cst_58 = arith.constant 1.000000e-24 : f32
    %237 = vector.broadcast %cst_58 : f32 to vector<1x32xf32>
    %238 = arith.maximumf %236, %237 : vector<1x32xf32>
    %239 = math.rsqrt %238 : vector<1x32xf32>
    %240 = vector.broadcast %239 : vector<1x32xf32> to vector<8x32xf32>
    %241 = arith.mulf %233, %240 : vector<8x32xf32>
    %cst_59 = arith.constant 0.000000e+00 : f32
    %242 = vector.broadcast %cst_59 : f32 to vector<8x96xf32>
    %243 = tpu.concatenate %241, %242 in 1 : vector<8x32xf32>, vector<8x96xf32> -> vector<8x128xf32>
    %cst_60 = arith.constant 0.000000e+00 : f32
    %244 = vector.broadcast %cst_60 : f32 to vector<1x96xf32>
    %245 = tpu.concatenate %5, %244 in 1 : vector<1x32xf32>, vector<1x96xf32> -> vector<1x128xf32>
    %cst_61 = arith.constant 0.000000e+00 : f32
    %246 = vector.broadcast %cst_61 : f32 to vector<7x128xf32>
    %247 = tpu.concatenate %243, %245, %246 in 0 : vector<8x128xf32>, vector<1x128xf32>, vector<7x128xf32> -> vector<16x128xf32>
    %c0_62 = arith.constant 0 : index
    %c0_63 = arith.constant 0 : index
    %248 = vector.load %arg2[%c0_62, %c0_63] : memref<16x128xf32, #tpu.memory_space<vmem>>, vector<16x128xf32>
    tpu.vector_store %arg2[%c0_62, %c0_63], %247 {strides = array<i32>} : memref<16x128xf32, #tpu.memory_space<vmem>>, vector<16x128xf32>,
    return
  }
}

</mosaic_0001>

<bundles_post_ra>
// kernel: tpu_custom_call.1
= control target key start
LH: loop header
LB: loop body
LE: loop exit
PB: predicated region body
PF: predicated region fallthrough
CT: control target
= control target key end

     0   :  { %7 = vsyncpa [#allocation3], 0  ;;  %s1539_s0 = inlined_call_operand.hbm [shape: f32[16,128], index: 0, kind: input, shape index: {}]   ;;  %s1540_s1 = inlined_call_operand.hbm [shape: f32[184,128], index: 1, kind: input, shape index: {}]   ;;  %s1541_s2 = inlined_call_operand.hbm [shape: f32[16,128], index: 2, kind: output, shape index: {}]  }
   0x1   :  { %8 = vsyncpa [#allocation6], 0 }
   0x2   :  { %9 = vsyncpa [#allocation4], 0  ;;  %s14_s11 = sshll.u32 %s1539_s0, 4  ;;  %s1307_s12 = smov [#allocation2]   ;;  %s15_s11 = int_to_ptr.hbm [resolvable:$true] %s14_s11 }
   0x3   :  { %s16_s13 = sshll.u32 %s1307_s12, 4  ;;  %s27_s16 = sshll.u32 %s1540_s1, 4  ;;  %s17_s13 = int_to_ptr.vmem [resolvable:$true] %s16_s13  ;;  %s28_s16 = int_to_ptr.hbm [resolvable:$true] %s27_s16 }
   0x4   :  { %s1308_s17 = smov 128   ;;  %s1309_s18 = smov 8  }
   0x5   :  { %22 = dma.hbm_to_vmem [thread:$0]  %s15_s11, 256, %s17_s13, [#allocation3], %s1308_s17, %s1308_s17, %s1309_s18  }
   0x6   :  { %s1310_s19 = smov [#allocation5]  }
   0x7   :  { %s29_s20 = sshll.u32 %s1310_s19, 4  ;;  %s30_s20 = int_to_ptr.vmem [resolvable:$true] %s29_s20 }
   0x8   :  { %35 = dma.hbm_to_vmem [thread:$0]  %s28_s16, 2944, %s30_s20, [#allocation6], %s1308_s17, %s1308_s17, %s1309_s18  }
   0x9   :  { %1301 = dma.done.wait [#allocation3], 256  }
   0xa   :  { %1302 = vsyncadd [#allocation3], 4294967040 }
   0xb   :  { %1303 = dma.done.wait [#allocation6], 2944  }
   0xc   :  { %1304 = vsyncadd [#allocation6], 4294964352  ;;  %v1350_v0 = vld [vmem:[#allocation5 + $0x48] sm:$0xff]  ;;  %v1352_v1 = vld [vmem:[#allocation5 + $0x40] sm:$0xff]  ;;  %v1311_v12 = vmov 0.0   ;;  %vm207_vm4 = vcmask 261120  }
   0xd   :  { %v259_v2 = vld [vmem:[#allocation5 + $0x28] sm:$0xff]  ;;  %304 = vmatpush.msra.mxu2 %v1350_v0  ;;  %v1355_v3 = vld [vmem:[#allocation5 + $0x38] sm:$0xff]  ;;  %v258_v4 = vld [vmem:[#allocation5 + $0x20] sm:$0xff]  ;;  %367 = vmatpush.msra.mxu3 %v1350_v0  ;;  %s1312_s0 = smov 32   ;;  %s1313_s1 = smov 64  }
   0xe   :  { %281 = vmatpush.msra.mxu1 %v259_v2  ;;  %v1357_v5 = vld [vmem:[#allocation5 + $0x30] sm:$0xff]  ;;  %v257_v6 = vld [vmem:[#allocation5 + $0x18] sm:$0xff]  ;;  %v1145_v9 = vld [vmem:[#allocation5 + $0x1] ss:$0 sm:$0xff]  ;;  %s1321_s21 = smov 96   ;;  %s1322_s23 = smov [#allocation7]  }
   0xf   :  { %v256_v7 = vld [vmem:[#allocation5 + $0x10] sm:$0xff]  ;;  %305 = vmatpush.msra.mxu2 %v1352_v1  ;;  %368 = vmatpush.msra.mxu3 %v1352_v1  ;;  %v1146_v27 = vld [vmem:[#allocation5 + $0x2] ss:$0 sm:$0xff]  ;;  %s1084_s24 = sshll.u32 %s1322_s23, 4  ;;  %s1086_s27 = sshll.u32 %s1541_s2, 4  ;;  %s1085_s24 = int_to_ptr.vmem [resolvable:$true] %s1084_s24  ;;  %s1087_s27 = int_to_ptr.hbm [resolvable:$true] %s1086_s27 }
  0x10   :  { %v231_v8 = vld [vmem:[#allocation2] sm:$0xff]  ;;  %282 = vmatpush.msra.mxu1 %v258_v4 }
  0x11   :  { %306 = vmatpush.msra.mxu2 %v1355_v3  ;;  %v234_v10 = vsub.f32 %v231_v8, %v1145_v9  ;;  %369 = vmatpush.msra.mxu3 %v1355_v3 }
  0x12   :  { %283 = vmatpush.msra.mxu1 %v257_v6 }
  0x13   :  { %307 = vmatpush.msra.mxu2 %v1357_v5  ;;  %v1104_v11 = vmul.f32 -10.0, %v234_v10  ;;  %370 = vmatpush.msra.mxu3 %v1357_v5 }
  0x14   :  { %284 = vmatpush.msra.mxu1 %v256_v7  ;;  %308 = vmatmul.f32.vlgmr.msra.gmra.mxu2 %v1311_v12 }
  0x15   :  { %v237_v13 = vmul.f32 1.442695, %v1104_v11  ;;  %577 = vmatpush.msrb.mxu2 %v1350_v0  ;;  %647 = vmatpush.msrb.mxu3 %v1350_v0 }
  0x16   :  { %507 = vmatpush.msrb.mxu1 %v1350_v0 }
  0x17   :  { %1153 = vpow2.f32 %v237_v13  ;;  %578 = vmatpush.msrb.mxu2 %v1352_v1  ;;  %648 = vmatpush.msrb.mxu3 %v1352_v1 }
  0x18   :  { %508 = vmatpush.msrb.mxu1 %v1352_v1 }
  0x19   :  { %579 = vmatpush.msrb.mxu2 %v1355_v3  ;;  %649 = vmatpush.msrb.mxu3 %v1355_v3 }
  0x1a   :  { %509 = vmatpush.msrb.mxu1 %v1355_v3 }
  0x1b   :  { %580 = vmatpush.msrb.mxu2 %v1357_v5  ;;  %650 = vmatpush.msrb.mxu3 %v1357_v5 }
  0x1c   :  { %510 = vmatpush.msrb.mxu1 %v1357_v5 }
  0x1d   :  { %v1154_v14 = vpop.eup %1153 }
  0x1e   :  { %v239_v15 = vadd.f32 1.0, %v1154_v14 }
  0x20   :  { %1155 = vrcp.f32 %v239_v15  ;;  %v251_v18 = vand.u32 2147483648, %v239_v15  ;;  %vm245_vm0 = vweird.f32 %v239_v15  ;;  %v249_v20 = vand.u32 2147483647, %v239_v15 }
  0x22   :  { %v252_v22 = vor.u32 1.1754944e-38, %v251_v18  ;;  %vm250_vm3 = vcmp.eq.f32.partialorder %v249_v20, 8.507059e+37  ;;  %v205_v20 = vld [vmem:[#allocation5 + $0x60] sm:$0xff] }
  0x26   :  { %v1156_v16 = vpop.eup %1155 }
  0x27   :  { %v241_v17 = vmul.f32 %v1156_v16, %v239_v15  ;;  %vm246_vm1 = vweird.f32 %v1156_v16 }
  0x28   :  { %vm247_vm2 = vmor %vm245_vm0, %vm246_vm1 }
  0x29   :  { %v242_v19 = vsub.f32 1.0, %v241_v17 }
  0x2b   :  { %v243_v21 = vmul.f32 %v1156_v16, %v242_v19  ;;  %v206_v19 = vld [vmem:[#allocation5 + $0x68] sm:$0xff] }
  0x2c   :  { %223 = vmatpush.msra.mxu0 %v206_v19  ;;  %870 = vmatpush.msra.mxu2 %v206_v19 }
  0x2d   :  { %v244_v23 = vadd.f32 %v1156_v16, %v243_v21  ;;  %v44_v21 = vld [vmem:[#allocation2 + $0x8] sm:$0x1] }
  0x2e   :  { %224 = vmatpush.msra.mxu0 %v205_v20  ;;  %871 = vmatpush.msra.mxu2 %v205_v20 }
  0x2f   :  { %v248_v24 = vsel %vm247_vm2, %v1156_v16, %v244_v23  ;;  %v204_v23 = vld [vmem:[#allocation5 + $0x58] sm:$0xff] }
  0x30   :  { %v253_v25 = vsel %vm250_vm3, %v252_v22, %v248_v24  ;;  %v45_v22 = vld [vmem:[#allocation5] sm:$0x1]  ;;  %225 = vmatpush.msra.mxu0 %v204_v23  ;;  %872 = vmatpush.msra.mxu2 %v204_v23 }
  0x31   :  { %v255_v26 = vmul.f32 %v253_v25, %v231_v8  ;;  %v1405_v24 = vadd.f32 %v45_v22, %v44_v21  ;;  %v203_v25 = vld [vmem:[#allocation5 + $0x50] sm:$0xff] }
  0x32   :  { %226 = vmatpush.msra.mxu0 %v203_v25  ;;  %873 = vmatpush.msra.mxu2 %v203_v25 }
  0x33   :  { %1105 = vmatmul.msk.f32.vlgmr.msra.gmra.mxu1 %vm207_vm4, %v255_v26  ;;  %v50_v26 = vand.u32 2139095040, %v1405_v24 }
  0x34   :  { %787 = vmatpush.msra.mxu1 %v1350_v0  ;;  %437 = vmatpush.msrb.mxu0 %v1350_v0 }
  0x36   :  { %788 = vmatpush.msra.mxu1 %v1352_v1  ;;  %438 = vmatpush.msrb.mxu0 %v1352_v1 }
  0x38   :  { %789 = vmatpush.msra.mxu1 %v1355_v3  ;;  %439 = vmatpush.msrb.mxu0 %v1355_v3 }
  0x3a   :  { %790 = vmatpush.msra.mxu1 %v1357_v5  ;;  %440 = vmatpush.msrb.mxu0 %v1357_v5 }
  0x97   :  { %v309_v29 = vpop.f32.mrf.mxu2 }
  0xb0   :  { %v286_v28 = vpop.f32.mrf.mxu1 }
  0xb1   :  { %v1383_v30 = vadd.f32 %v1146_v27, %v286_v28  ;;  %v51_v27 = vshrl.u32 %v50_v26, 23  ;;  %v47_v28 = vand.u32 2147483647, %v1405_v24 }
  0xb3   :  { %v312_v31 = vadd.f32 %v309_v29, %v1383_v30  ;;  %v1100_v29 = vadd.s32 4294967169, %v51_v27 }
  0xb5   :  { %1157 = vtanh.f32 %v312_v31  ;;  %v1106_v33 = vmul.f32 -1.442695, %v312_v31  ;;  %v57_v31 = vadd.s32 1, %v1100_v29 }
  0xb7   :  { %1159 = vpow2.f32 %v1106_v33  ;;  %vm58_vm13 = vcmp.gt.s32.totalorder %v57_v31, 0 }
  0xb8   :  { %v59_v33 = vsel %vm58_vm13, %v57_v31, 0 }
  0xbb   :  { %v1158_v32 = vpop.eup %1157 }
  0xbc   :  { %335 = vrot.lane.b32.xlu0 %v1158_v32, %s1312_s0  ;;  %v54_v32 = vand.u32 8388607, %v47_v28 }
  0xbd   :  { %v1160_v34 = vpop.eup %1159 }
  0xbe   :  { %v316_v35 = vadd.f32 1.0, %v1160_v34  ;;  %v61_v34 = vand.u32 31, %v59_v33 }
  0xc0   :  { %1161 = vrcp.f32 %v316_v35  ;;  %v328_v41 = vand.u32 2147483648, %v316_v35  ;;  %vm322_vm6 = vweird.f32 %v316_v35  ;;  %v326_v42 = vand.u32 2147483647, %v316_v35 }
  0xc2   :  { %v329_v44 = vor.u32 1.1754944e-38, %v328_v41  ;;  %vm327_vm8 = vcmp.eq.f32.partialorder %v326_v42, 8.507059e+37  ;;  %v1316_v42 = vmov 2131351028  }
  0xc6   :  { %v1162_v36 = vpop.eup %1161 }
  0xc7   :  { %v318_v37 = vmul.f32 %v1162_v36, %v316_v35  ;;  %vm323_vm5 = vweird.f32 %v1162_v36  ;;  %v55_v35 = vor.u32 8388608, %v54_v32 }
  0xc8   :  { %vm324_vm7 = vmor %vm322_vm6, %vm323_vm5 }
  0xc9   :  { %v319_v38 = vsub.f32 1.0, %v318_v37  ;;  %v62_v37 = vsub.s32 32, %v61_v34 }
  0xcb   :  { %v320_v39 = vmul.f32 %v1162_v36, %v319_v38  ;;  %v1314_v38 = vmov 683565275  }
  0xcd   :  { %v321_v40 = vadd.f32 %v1162_v36, %v320_v39  ;;  %v64_v39 = vshll.u32 %v1314_v38, %v61_v34 }
  0xcf   :  { %v325_v43 = vsel %vm324_vm7, %v1162_v36, %v321_v40  ;;  %v1415_v36 = vshrl.u32 %v59_v33, 5  ;;  %v1315_v40 = vmov 2475754826  }
  0xd0   :  { %v330_v46 = vsel %vm327_vm8, %v329_v44, %v325_v43  ;;  %v67_v41 = vshll.u32 %v1315_v40, %v61_v34  ;;  %v70_v43 = vshll.u32 %v1316_v42, %v61_v34  ;;  %v1317_v44 = vmov 2102212464  }
  0xd1   :  { %v333_v48 = vmul.f32 0.0, %v330_v46  ;;  %vm79_vm14 = vcmp.lt.s32.totalorder %v1415_v36, 1  ;;  %vm82_vm15 = vcmp.lt.s32.totalorder %v1415_v36, 4  ;;  %vm81_vm0 = vcmp.lt.s32.totalorder %v1415_v36, 3 }
  0xd2   :  { %vm80_vm1 = vcmp.lt.s32.totalorder %v1415_v36, 2 }
 0x12e   :  { %v336_v45 = vpop.permute.xlu0 %335 }
 0x12f   :  { %v338_v47 = vmul.f32 %v336_v45, %v330_v46  ;;  %v73_v45 = vshll.u32 %v1317_v44, %v61_v34 }
 0x131   :  { %340 = vrot.lane.b32.xlu0 %v338_v47, %s1312_s0 }
 0x1a3   :  { %v341_v49 = vpop.permute.xlu0 %340 }
 0x1a4   :  { %v343_v50 = vadd.f32 %v341_v49, %v333_v48  ;;  %v65_v48 = vshrl.u32 %v1315_v40, %v62_v37  ;;  %v68_v49 = vshrl.u32 %v1316_v42, %v62_v37 }
 0x1a6   :  { %1163 = vtanh.f32 %v343_v50  ;;  %v400_v14 = vrot.slane %v343_v50, 7  ;;  %v71_v50 = vshrl.u32 %v1317_v44, %v62_v37 }
 0x1ac   :  { %v1164_v51 = vpop.eup %1163 }
 0x1ad   :  { %346 = vrot.lane.b32.xlu1 %v1164_v51, %s1312_s0 }
 0x21f   :  { %v347_v52 = vpop.permute.xlu1 %346 }
 0x220   :  { %v1389_v53 = vmul.f32 %v347_v52, %v330_v46  ;;  %v1318_v46 = vmov 920167782   ;;  %v1319_v52 = vmov 1326507024  }
 0x221   :  { %v76_v47 = vshll.u32 %v1318_v46, %v61_v34  ;;  %v74_v51 = vshrl.u32 %v1318_v46, %v62_v37 }
 0x222   :  { %351 = vrot.lane.b32.xlu1 %v1389_v53, %s1313_s1 }
 0x294   :  { %v352_v54 = vpop.permute.xlu1 %351 }
 0x295   :  { %1107 = vmatmul.msk.f32.vlgmr.msra.gmra.mxu3 %vm207_vm4, %v352_v54  ;;  %v77_v54 = vshrl.u32 %v1319_v52, %v62_v37 }
 0x318   :  { %v372_v55 = vpop.f32.mrf.mxu3 }
 0x319   :  { %v376_v56 = vrot.slane %v372_v55, 7  ;;  %v1418_v55 = vshll.u32 %v55_v35, 8 }
 0x31b   :  { %v378_v57 = vadd.f32 %v376_v56, %v1383_v30  ;;  %v66_v56 = vor.u32 %v65_v48, %v64_v39  ;;  %v1320_v39 = vmov 0  }
 0x31d   :  { %1165 = vtanh.f32 %v378_v57  ;;  %v1108_v59 = vmul.f32 -1.442695, %v378_v57  ;;  %v69_v57 = vor.u32 %v68_v49, %v67_v41 }
 0x31f   :  { %1167 = vpow2.f32 %v1108_v59  ;;  %v75_v59 = vor.u32 %v74_v51, %v73_v45 }
 0x323   :  { %v1166_v58 = vpop.eup %1165 }
 0x324   :  { %404 = vrot.lane.b32.xlu2 %v1166_v58, %s1312_s0  ;;  %v72_v58 = vor.u32 %v71_v50, %v70_v43 }
 0x325   :  { %v1168_v60 = vpop.eup %1167 }
 0x326   :  { %v382_v61 = vadd.f32 1.0, %v1168_v60  ;;  %v78_v60 = vor.u32 %v77_v54, %v76_v47 }
 0x328   :  { %1169 = vrcp.f32 %v382_v61  ;;  %v394_v7 = vand.u32 2147483648, %v382_v61  ;;  %vm388_vm10 = vweird.f32 %v382_v61  ;;  %v392_v8 = vand.u32 2147483647, %v382_v61 }
 0x32a   :  { %v395_v10 = vor.u32 1.1754944e-38, %v394_v7  ;;  %vm393_vm12 = vcmp.eq.f32.partialorder %v392_v8, 8.507059e+37  ;;  %v96_v7 = vand.u32 65535, %v1418_v55  ;;  %v97_v8 = vshrl.u32 %v1418_v55, 16 }
 0x32e   :  { %v1170_v62 = vpop.eup %1169 }
 0x32f   :  { %v384_v63 = vmul.f32 %v1170_v62, %v382_v61  ;;  %vm389_vm9 = vweird.f32 %v1170_v62  ;;  %v87_v61 = vsel %vm79_vm14, %v66_v56, %v69_v57 }
 0x330   :  { %vm390_vm11 = vmor %vm388_vm10, %vm389_vm9  ;;  %vm49_vm10 = vcmp.lt.s32.totalorder %v1405_v24, 0 }
 0x331   :  { %v385_v2 = vsub.f32 1.0, %v384_v63  ;;  %v88_v63 = vsel %vm82_vm15, %v75_v59, 920167782 }
 0x333   :  { %v386_v4 = vmul.f32 %v1170_v62, %v385_v2  ;;  %v92_v2 = vsel %vm82_vm15, %v78_v60, 1326507024 }
 0x335   :  { %v387_v6 = vadd.f32 %v1170_v62, %v386_v4  ;;  %v89_v4 = vsel %vm81_vm0, %v72_v58, %v88_v63 }
 0x337   :  { %v391_v9 = vsel %vm390_vm11, %v1170_v62, %v387_v6  ;;  %v91_v62 = vsel %vm79_vm14, %v69_v57, %v72_v58  ;;  %v93_v6 = vsel %vm81_vm0, %v75_v59, %v92_v2  ;;  %vm48_vm11 = vcmp.le.f32.partialorder %v47_v28, 0.7853982 }
 0x338   :  { %v1396_v12 = vsel %vm393_vm12, %v395_v10, %v391_v9  ;;  %v90_v9 = vsel %vm80_vm1, %v87_v61, %v89_v4  ;;  %v94_v10 = vsel %vm80_vm1, %v91_v62, %v93_v6 }
 0x339   :  { %v402_v15 = vmul.f32 %v400_v14, %v1396_v12  ;;  %v120_v14 = vand.u32 65535, %v90_v9 }
 0x33b   :  { %v122_v23 = vmul.u32 %v120_v14, %v96_v7  ;;  %v124_v26 = vmul.u32 %v120_v14, %v97_v8 }
 0x33d   :  { %v129_v52 = vshrl.u32 %v124_v26, 16 }
 0x37e   :  { %v405_v11 = vpop.permute.xlu2 %404 }
 0x37f   :  { %v407_v13 = vmul.f32 %v405_v11, %v1396_v12  ;;  %v98_v11 = vand.u32 65535, %v94_v10 }
 0x381   :  { %409 = vrot.lane.b32.xlu2 %v407_v13, %s1312_s0  ;;  %v99_v13 = vshrl.u32 %v94_v10, 16  ;;  %v100_v20 = vmul.u32 %v98_v11, %v96_v7  ;;  %v102_v22 = vmul.u32 %v98_v11, %v97_v8 }
 0x383   :  { %v101_v21 = vmul.u32 %v99_v13, %v96_v7  ;;  %v103_v29 = vmul.u32 %v99_v13, %v97_v8  ;;  %v106_v32 = vshll.u32 %v102_v22, 16  ;;  %v107_v49 = vshrl.u32 %v102_v22, 16 }
 0x385   :  { %v104_v31 = vshll.u32 %v101_v21, 16  ;;  %v105_v42 = vshrl.u32 %v101_v21, 16 }
 0x387   :  { %vm108_vm2 = vc.u32 %v100_v20, %v104_v31 }
 0x388   :  { %v109_v40 = vsel %vm108_vm2, 1, %v1320_v39 }
 0x389   :  { %v111_v43 = vadd.s32 %v109_v40, %v103_v29 }
 0x3db   :  { %v410_v16 = vpop.permute.xlu2 %409 }
 0x3dc   :  { %v1401_v17 = vadd.f32 %v410_v16, %v402_v15  ;;  %v121_v15 = vshrl.u32 %v90_v9, 16 }
 0x3de   :  { %1171 = vtanh.f32 %v1401_v17  ;;  %v123_v25 = vmul.u32 %v121_v15, %v96_v7  ;;  %v125_v33 = vmul.u32 %v121_v15, %v97_v8 }
 0x3e0   :  { %v126_v34 = vshll.u32 %v123_v25, 16  ;;  %v127_v46 = vshrl.u32 %v123_v25, 16 }
 0x3e2   :  { %vm130_vm3 = vc.u32 %v122_v23, %v126_v34  ;;  %v132_v41 = vadd.s32 %v126_v34, %v122_v23 }
 0x3e3   :  { %v131_v44 = vsel %vm130_vm3, 1, %v1320_v39 }
 0x3e4   :  { %v1172_v18 = vpop.eup %1171  ;;  %v133_v47 = vadd.s32 %v131_v44, %v125_v33 }
 0x3e5   :  { %415 = vrot.lane.b32.xlu0 %v1172_v18, %s1312_s0  ;;  %v63_v18 = vshrl.u32 %v1314_v38, %v62_v37  ;;  %v128_v37 = vshll.u32 %v124_v26, 16  ;;  %v84_v38 = vsel %vm82_vm15, %v72_v58, 2102212464  ;;  %vm190_vm15 = vweird.f32 %v1405_v24 }
 0x3e6   :  { %v85_v48 = vsel %vm81_vm0, %v69_v57, %v84_v38 }
 0x3e7   :  { %v83_v35 = vsel %vm79_vm14, %v63_v18, %v66_v56  ;;  %vm134_vm6 = vc.u32 %v132_v41, %v128_v37  ;;  %v136_v58 = vadd.s32 %v132_v41, %v128_v37 }
 0x3e8   :  { %v135_v51 = vsel %vm134_vm6, 1, %v1320_v39  ;;  %v86_v59 = vsel %vm80_vm1, %v83_v35, %v85_v48  ;;  %vm841_vm6 = vcmask 1041408  }
 0x3e9   :  { %v137_v54 = vadd.s32 %v135_v51, %v133_v47  ;;  %v140_v63 = vmul.u32 %v1418_v55, %v86_v59 }
 0x3eb   :  { %v138_v60 = vadd.s32 %v137_v54, %v127_v46 }
 0x3ed   :  { %v139_v62 = vadd.s32 %v138_v60, %v129_v52 }
 0x3ef   :  { %v143_v2 = vadd.s32 1, %v139_v62 }
 0x457   :  { %v416_v16 = vpop.permute.xlu0 %415 }
 0x458   :  { %v1442_v19 = vmul.f32 %v416_v16, %v1396_v12  ;;  %v110_v12 = vadd.s32 %v104_v31, %v100_v20 }
 0x45a   :  { %v420_v27 = vrot.slane %v1442_v19, 1  ;;  %vm112_vm5 = vc.u32 %v110_v12, %v106_v32 }
 0x45b   :  { %v113_v45 = vsel %vm112_vm5, 1, %v1320_v39  ;;  %vm839_vm5 = vcmask 1040384  }
 0x45c   :  { %421 = vrot.lane.b32.xlu1 %v420_v27, %s1313_s1  ;;  %v115_v50 = vadd.s32 %v113_v45, %v111_v43 }
 0x45e   :  { %v116_v56 = vadd.s32 %v115_v50, %v105_v42 }
 0x460   :  { %v117_v61 = vadd.s32 %v116_v56, %v107_v49 }
 0x462   :  { %vm142_vm7 = vc.u32 %v117_v61, %v136_v58  ;;  %v141_v36 = vadd.s32 %v136_v58, %v117_v61 }
 0x463   :  { %v144_v4 = vsel %vm142_vm7, %v143_v2, %v139_v62 }
 0x464   :  { %v145_v6 = vadd.s32 %v144_v4, %v140_v63 }
 0x466   :  { %v146_v57 = vadd.s32 536870912, %v145_v6 }
 0x468   :  { %v147_v7 = vshrl.u32 %v146_v57, 30 }
 0x46a   :  { %v148_v8 = vshll.u32 %v147_v7, 30  ;;  %v171_v31 = vsub.s32 4, %v147_v7 }
 0x46c   :  { %v149_v9 = vsub.s32 %v145_v6, %v148_v8  ;;  %v172_v34 = vsel %vm49_vm10, %v171_v31, %v147_v7 }
 0x46d   :  { %v174_v37 = vsel %vm48_vm11, 0, %v172_v34 }
 0x46e   :  { %vm150_vm8 = vcmp.lt.s32.totalorder %v149_v9, 0  ;;  %v151_v10 = vsub.s32 0, %v149_v9  ;;  %v191_v42 = vadd.s32 3, %v174_v37 }
 0x470   :  { %v152_v11 = vsel %vm150_vm8, %v151_v10, %v149_v9  ;;  %v192_v47 = vand.u32 3, %v191_v42 }
 0x471   :  { %v153_v13 = vclz %v152_v11 }
 0x472   :  { %vm197_vm12 = vcmp.eq.s32.totalorder %v192_v47, 2  ;;  %vm194_vm13 = vcmp.eq.s32.totalorder %v192_v47, 0  ;;  %vm193_vm14 = vcmp.lt.s32.totalorder %v192_v47, 2 }
 0x473   :  { %v1101_v14 = vadd.s32 4294967294, %v153_v13 }
 0x475   :  { %vm1102_vm9 = vcmp.lt.s32.totalorder %v1101_v14, 0 }
 0x476   :  { %v156_v15 = vsel %vm1102_vm9, 0, %v1101_v14 }
 0x477   :  { %v157_v16 = vsub.s32 32, %v156_v15  ;;  %v158_v18 = vshll.u32 %v149_v9, %v156_v15  ;;  %v161_v20 = vsub.s32 4294967266, %v156_v15 }
 0x479   :  { %v159_v55 = vshrl.u32 %v141_v36, %v157_v16  ;;  %v162_v21 = vadd.s32 127, %v161_v20 }
 0x47b   :  { %v160_v22 = vor.u32 %v159_v55, %v158_v18  ;;  %v163_v23 = vshll.u32 %v162_v21, 23  ;;  %v470_v18 = vrot.slane %v1401_v17, 7 }
 0x47d   :  { %v164_v25 = vor.u32 4788187, %v163_v23  ;;  %v167_v26 = vcvt.s32.f32 %v160_v22 }
 0x47f   :  { %v165_v27 = vand.u32 2147483647, %v164_v25 }
 0x481   :  { %v168_v29 = vmul.f32 %v167_v26, %v165_v27  ;;  %v840_v26 = vsel %vm839_vm5, %v1389_v53, %v1442_v19 }
 0x483   :  { %v169_v32 = vxor.u32 2147483648, %v168_v29 }
 0x485   :  { %v170_v33 = vsel %vm49_vm10, %v169_v32, %v168_v29 }
 0x486   :  { %v173_v35 = vsel %vm48_vm11, %v1405_v24, %v170_v33  ;;  %vm843_vm11 = vcmask 1042432  }
 0x487   :  { %v175_v12 = vmul.f32 %v173_v35, %v173_v35 }
 0x489   :  { %v176_v38 = vmul.f32 -0.001358992, %v175_v12  ;;  %v183_v39 = vmul.f32 -0.00019511016, %v175_v12 }
 0x48b   :  { %v177_v40 = vadd.f32 0.041655596, %v176_v38  ;;  %v184_v41 = vadd.f32 0.008332121, %v183_v39 }
 0x48d   :  { %v178_v43 = vmul.f32 %v177_v40, %v175_v12  ;;  %v185_v44 = vmul.f32 %v184_v41, %v175_v12 }
 0x48f   :  { %v179_v45 = vadd.f32 -0.4999988, %v178_v43  ;;  %v186_v46 = vadd.f32 -0.16666654, %v185_v44 }
 0x491   :  { %v180_v48 = vmul.f32 %v179_v45, %v175_v12  ;;  %v187_v49 = vmul.f32 %v186_v46, %v175_v12 }
 0x493   :  { %v181_v28 = vadd.f32 1.0, %v180_v48  ;;  %v188_v50 = vadd.f32 1.0, %v187_v49 }
 0x495   :  { %v189_v51 = vmul.f32 %v188_v50, %v173_v35  ;;  %v198_v52 = vxor.u32 2147483648, %v181_v28 }
 0x497   :  { %v195_v54 = vxor.u32 2147483648, %v189_v51  ;;  %v199_v56 = vsel %vm197_vm12, %v198_v52, %v189_v51 }
 0x499   :  { %v196_v58 = vsel %vm194_vm13, %v181_v28, %v195_v54 }
 0x49a   :  { %v200_v59 = vsel %vm193_vm14, %v196_v58, %v199_v56 }
 0x49b   :  { %v201_v60 = vsel %vm190_vm15, nan, %v200_v59 }
 0x49c   :  { %v1460_v61 = vmul.f32 0.1, %v201_v60 }
 0x49e   :  { %1103 = vmatmul.msk.f32.vlgmr.msra.gmra.mxu0 %vm207_vm4, %v1460_v61 }
 0x49f   :  { %717 = vmatpush.msra.mxu0 %v1350_v0 }
 0x4a1   :  { %718 = vmatpush.msra.mxu0 %v1352_v1 }
 0x4a3   :  { %719 = vmatpush.msra.mxu0 %v1355_v3 }
 0x4a5   :  { %720 = vmatpush.msra.mxu0 %v1357_v5 }
 0x4ce   :  { %v422_v62 = vpop.permute.xlu1 %421 }
 0x4cf   :  { %1109 = vmatmul.msk.f32.vlgmr.msrb.gmra.mxu0 %vm207_vm4, %v422_v62 }
 0x51b   :  { %v1469_v24 = vpop.f32.mrf.mxu0 }
 0x54c   :  { %v442_v63 = vpop.f32.mrf.mxu0 }
 0x54d   :  { %v446_v2 = vrot.slane %v442_v63, 6 }
 0x54f   :  { %v448_v4 = vadd.f32 %v446_v2, %v1383_v30 }
 0x551   :  { %1173 = vtanh.f32 %v448_v4  ;;  %v1110_v0 = vmul.f32 -1.442695, %v448_v4 }
 0x553   :  { %1175 = vpow2.f32 %v1110_v0 }
 0x557   :  { %v1174_v6 = vpop.eup %1173 }
 0x558   :  { %474 = vrot.lane.b32.xlu2 %v1174_v6, %s1312_s0 }
 0x559   :  { %v1176_v1 = vpop.eup %1175 }
 0x55a   :  { %v452_v57 = vadd.f32 1.0, %v1176_v1 }
 0x55c   :  { %1177 = vrcp.f32 %v452_v57  ;;  %v464_v10 = vand.u32 2147483648, %v452_v57  ;;  %vm458_vm1 = vweird.f32 %v452_v57  ;;  %v462_v11 = vand.u32 2147483647, %v452_v57 }
 0x55e   :  { %v465_v14 = vor.u32 1.1754944e-38, %v464_v10  ;;  %vm463_vm3 = vcmp.eq.f32.partialorder %v462_v11, 8.507059e+37 }
 0x562   :  { %v1178_v3 = vpop.eup %1177 }
 0x563   :  { %v454_v5 = vmul.f32 %v1178_v3, %v452_v57  ;;  %vm459_vm0 = vweird.f32 %v1178_v3 }
 0x564   :  { %vm460_vm2 = vmor %vm458_vm1, %vm459_vm0  ;;  %vm845_vm0 = vcmask 1043456  }
 0x565   :  { %v455_v7 = vsub.f32 1.0, %v454_v5 }
 0x567   :  { %v456_v8 = vmul.f32 %v1178_v3, %v455_v7 }
 0x569   :  { %v457_v9 = vadd.f32 %v1178_v3, %v456_v8 }
 0x56b   :  { %v461_v13 = vsel %vm460_vm2, %v1178_v3, %v457_v9 }
 0x56c   :  { %v466_v15 = vsel %vm463_vm3, %v465_v14, %v461_v13 }
 0x56d   :  { %v472_v20 = vmul.f32 %v470_v18, %v466_v15 }
 0x5b2   :  { %v475_v36 = vpop.permute.xlu2 %474 }
 0x5b3   :  { %v477_v16 = vmul.f32 %v475_v36, %v466_v15 }
 0x5b5   :  { %479 = vrot.lane.b32.xlu0 %v477_v16, %s1312_s0 }
 0x627   :  { %v480_v55 = vpop.permute.xlu0 %479 }
 0x628   :  { %v482_v21 = vadd.f32 %v480_v55, %v472_v20 }
 0x62a   :  { %1179 = vtanh.f32 %v482_v21  ;;  %v540_v48 = vrot.slane %v482_v21, 7 }
 0x630   :  { %v1180_v22 = vpop.eup %1179 }
 0x631   :  { %485 = vrot.lane.b32.xlu1 %v1180_v22, %s1312_s0 }
 0x6a3   :  { %v486_v23 = vpop.permute.xlu1 %485 }
 0x6a4   :  { %v488_v25 = vmul.f32 %v486_v23, %v466_v15 }
 0x6a6   :  { %v490_v27 = vrot.slane %v488_v25, 2  ;;  %v842_v29 = vsel %vm841_vm6, %v840_v26, %v488_v25 }
 0x6a8   :  { %491 = vrot.lane.b32.xlu2 %v490_v27, %s1313_s1 }
 0x702   :  { %v492_v17 = vpop.permute.xlu2 %491 }
 0x703   :  { %1111 = vmatmul.msk.f32.vlgmr.msrb.gmra.mxu1 %vm207_vm4, %v492_v17 }
 0x780   :  { %v512_v31 = vpop.f32.mrf.mxu1 }
 0x781   :  { %v516_v32 = vrot.slane %v512_v31, 5 }
 0x783   :  { %v518_v33 = vadd.f32 %v516_v32, %v1383_v30 }
 0x785   :  { %1181 = vtanh.f32 %v518_v33  ;;  %v1112_v35 = vmul.f32 -1.442695, %v518_v33 }
 0x787   :  { %1183 = vpow2.f32 %v1112_v35 }
 0x78b   :  { %v1182_v34 = vpop.eup %1181 }
 0x78c   :  { %544 = vrot.lane.b32.xlu0 %v1182_v34, %s1312_s0 }
 0x78d   :  { %v1184_v12 = vpop.eup %1183 }
 0x78e   :  { %v522_v37 = vadd.f32 1.0, %v1184_v12 }
 0x790   :  { %1185 = vrcp.f32 %v522_v37  ;;  %v534_v41 = vand.u32 2147483648, %v522_v37  ;;  %vm528_vm8 = vweird.f32 %v522_v37  ;;  %v532_v42 = vand.u32 2147483647, %v522_v37 }
 0x792   :  { %v535_v44 = vor.u32 1.1754944e-38, %v534_v41  ;;  %vm533_vm10 = vcmp.eq.f32.partialorder %v532_v42, 8.507059e+37 }
 0x796   :  { %v1186_v53 = vpop.eup %1185 }
 0x797   :  { %v524_v19 = vmul.f32 %v1186_v53, %v522_v37  ;;  %vm529_vm7 = vweird.f32 %v1186_v53 }
 0x798   :  { %vm530_vm9 = vmor %vm528_vm8, %vm529_vm7  ;;  %vm847_vm7 = vcmask 1044480  }
 0x799   :  { %v525_v38 = vsub.f32 1.0, %v524_v19 }
 0x79b   :  { %v526_v39 = vmul.f32 %v1186_v53, %v525_v38 }
 0x79d   :  { %v527_v40 = vadd.f32 %v1186_v53, %v526_v39 }
 0x79f   :  { %v531_v43 = vsel %vm530_vm9, %v1186_v53, %v527_v40 }
 0x7a0   :  { %v536_v46 = vsel %vm533_vm10, %v535_v44, %v531_v43 }
 0x7a1   :  { %v542_v49 = vmul.f32 %v540_v48, %v536_v46 }
 0x7fe   :  { %v545_v45 = vpop.permute.xlu0 %544 }
 0x7ff   :  { %v547_v47 = vmul.f32 %v545_v45, %v536_v46 }
 0x801   :  { %549 = vrot.lane.b32.xlu1 %v547_v47, %s1312_s0 }
 0x873   :  { %v550_v28 = vpop.permute.xlu1 %549 }
 0x874   :  { %v552_v50 = vadd.f32 %v550_v28, %v542_v49 }
 0x876   :  { %1187 = vtanh.f32 %v552_v50  ;;  %v610_v15 = vrot.slane %v552_v50, 7 }
 0x87c   :  { %v1188_v51 = vpop.eup %1187 }
 0x87d   :  { %555 = vrot.lane.b32.xlu2 %v1188_v51, %s1312_s0 }
 0x8d7   :  { %v556_v52 = vpop.permute.xlu2 %555 }
 0x8d8   :  { %v558_v54 = vmul.f32 %v556_v52, %v536_v46 }
 0x8da   :  { %v560_v56 = vrot.slane %v558_v54, 3  ;;  %v844_v58 = vsel %vm843_vm11, %v842_v29, %v558_v54 }
 0x8dc   :  { %561 = vrot.lane.b32.xlu0 %v560_v56, %s1313_s1 }
 0x94e   :  { %v562_v59 = vpop.permute.xlu0 %561 }
 0x94f   :  { %1113 = vmatmul.msk.f32.vlgmr.msrb.gmra.mxu2 %vm207_vm4, %v562_v59 }
 0x9d2   :  { %v582_v60 = vpop.f32.mrf.mxu2 }
 0x9d3   :  { %v586_v62 = vrot.slane %v582_v60, 4 }
 0x9d5   :  { %v588_v63 = vadd.f32 %v586_v62, %v1383_v30 }
 0x9d7   :  { %1189 = vtanh.f32 %v588_v63  ;;  %v1114_v4 = vmul.f32 -1.442695, %v588_v63 }
 0x9d9   :  { %1191 = vpow2.f32 %v1114_v4 }
 0x9dd   :  { %v1190_v2 = vpop.eup %1189 }
 0x9de   :  { %614 = vrot.lane.b32.xlu1 %v1190_v2, %s1312_s0 }
 0x9df   :  { %v1192_v6 = vpop.eup %1191 }
 0x9e0   :  { %v592_v0 = vadd.f32 1.0, %v1192_v6 }
 0x9e2   :  { %1193 = vrcp.f32 %v592_v0  ;;  %v604_v8 = vand.u32 2147483648, %v592_v0  ;;  %vm598_vm13 = vweird.f32 %v592_v0  ;;  %v602_v9 = vand.u32 2147483647, %v592_v0 }
 0x9e4   :  { %v605_v11 = vor.u32 1.1754944e-38, %v604_v8  ;;  %vm603_vm15 = vcmp.eq.f32.partialorder %v602_v9, 8.507059e+37 }
 0x9e8   :  { %v1194_v1 = vpop.eup %1193 }
 0x9e9   :  { %v594_v57 = vmul.f32 %v1194_v1, %v592_v0  ;;  %vm599_vm12 = vweird.f32 %v1194_v1 }
 0x9ea   :  { %vm600_vm14 = vmor %vm598_vm13, %vm599_vm12  ;;  %vm849_vm12 = vcmask 1045504  }
 0x9eb   :  { %v595_v3 = vsub.f32 1.0, %v594_v57 }
 0x9ed   :  { %v596_v5 = vmul.f32 %v1194_v1, %v595_v3 }
 0x9ef   :  { %v597_v7 = vadd.f32 %v1194_v1, %v596_v5 }
 0x9f1   :  { %v601_v10 = vsel %vm600_vm14, %v1194_v1, %v597_v7 }
 0x9f2   :  { %v606_v14 = vsel %vm603_vm15, %v605_v11, %v601_v10 }
 0x9f3   :  { %v612_v16 = vmul.f32 %v610_v15, %v606_v14 }
 0xa50   :  { %v615_v13 = vpop.permute.xlu1 %614 }
 0xa51   :  { %v617_v36 = vmul.f32 %v615_v13, %v606_v14 }
 0xa53   :  { %619 = vrot.lane.b32.xlu2 %v617_v36, %s1312_s0 }
 0xaad   :  { %v620_v18 = vpop.permute.xlu2 %619 }
 0xaae   :  { %v622_v20 = vadd.f32 %v620_v18, %v612_v16 }
 0xab0   :  { %1195 = vtanh.f32 %v622_v20  ;;  %v680_v45 = vrot.slane %v622_v20, 7 }
 0xab6   :  { %v1196_v55 = vpop.eup %1195 }
 0xab7   :  { %625 = vrot.lane.b32.xlu0 %v1196_v55, %s1312_s0 }
 0xb29   :  { %v626_v21 = vpop.permute.xlu0 %625 }
 0xb2a   :  { %v628_v22 = vmul.f32 %v626_v21, %v606_v14 }
 0xb2c   :  { %v630_v23 = vrot.slane %v628_v22, 4  ;;  %v846_v25 = vsel %vm845_vm0, %v844_v58, %v628_v22 }
 0xb2e   :  { %631 = vrot.lane.b32.xlu1 %v630_v23, %s1313_s1 }
 0xba0   :  { %v632_v26 = vpop.permute.xlu1 %631 }
 0xba1   :  { %1115 = vmatmul.msk.f32.vlgmr.msrb.gmra.mxu3 %vm207_vm4, %v632_v26 }
 0xc24   :  { %v652_v27 = vpop.f32.mrf.mxu3 }
 0xc25   :  { %v656_v29 = vrot.slane %v652_v27, 3 }
 0xc27   :  { %v658_v17 = vadd.f32 %v656_v29, %v1383_v30 }
 0xc29   :  { %1197 = vtanh.f32 %v658_v17  ;;  %v1116_v32 = vmul.f32 -1.442695, %v658_v17 }
 0xc2b   :  { %1199 = vpow2.f32 %v1116_v32 }
 0xc2f   :  { %v1198_v31 = vpop.eup %1197 }
 0xc30   :  { %684 = vrot.lane.b32.xlu2 %v1198_v31, %s1312_s0 }
 0xc31   :  { %v1200_v33 = vpop.eup %1199 }
 0xc32   :  { %v662_v34 = vadd.f32 1.0, %v1200_v33 }
 0xc34   :  { %1201 = vrcp.f32 %v662_v34  ;;  %v674_v38 = vand.u32 2147483648, %v662_v34  ;;  %vm668_vm2 = vweird.f32 %v662_v34  ;;  %v672_v39 = vand.u32 2147483647, %v662_v34 }
 0xc36   :  { %v675_v41 = vor.u32 1.1754944e-38, %v674_v38  ;;  %vm673_vm6 = vcmp.eq.f32.partialorder %v672_v39, 8.507059e+37 }
 0xc3a   :  { %v1202_v35 = vpop.eup %1201 }
 0xc3b   :  { %v664_v12 = vmul.f32 %v1202_v35, %v662_v34  ;;  %vm669_vm1 = vweird.f32 %v1202_v35 }
 0xc3c   :  { %vm670_vm3 = vmor %vm668_vm2, %vm669_vm1  ;;  %vm851_vm1 = vcmask 1046528   ;;  %vm898_vm2 = vcmask 130048  }
 0xc3d   :  { %v665_v37 = vsub.f32 1.0, %v664_v12 }
 0xc3f   :  { %v666_v53 = vmul.f32 %v1202_v35, %v665_v37 }
 0xc41   :  { %v667_v19 = vadd.f32 %v1202_v35, %v666_v53 }
 0xc43   :  { %v671_v40 = vsel %vm670_vm3, %v1202_v35, %v667_v19  ;;  %vm925_vm3 = vcmask 64512  }
 0xc44   :  { %v676_v43 = vsel %vm673_vm6, %v675_v41, %v671_v40 }
 0xc45   :  { %v682_v46 = vmul.f32 %v680_v45, %v676_v43 }
 0xc8a   :  { %v685_v42 = vpop.permute.xlu2 %684 }
 0xc8b   :  { %v687_v44 = vmul.f32 %v685_v42, %v676_v43 }
 0xc8d   :  { %689 = vrot.lane.b32.xlu0 %v687_v44, %s1312_s0 }
 0xcff   :  { %v690_v47 = vpop.permute.xlu0 %689 }
 0xd00   :  { %v692_v48 = vadd.f32 %v690_v47, %v682_v46 }
 0xd02   :  { %1203 = vtanh.f32 %v692_v48  ;;  %v750_v13 = vrot.slane %v692_v48, 7 }
 0xd08   :  { %v1204_v49 = vpop.eup %1203 }
 0xd09   :  { %695 = vrot.lane.b32.xlu1 %v1204_v49, %s1312_s0  ;;  %v1147_v49 = vld [vmem:[#allocation5 + $0x4] ss:$0 sm:$0xff] }
 0xd7b   :  { %v696_v28 = vpop.permute.xlu1 %695 }
 0xd7c   :  { %v698_v50 = vmul.f32 %v696_v28, %v676_v43  ;;  %v1022_v28 = vld [vmem:[#allocation5 + $0xb0] sm:$0xff] }
 0xd7d   :  { %1038 = vmatpush.msrb.mxu2 %v1022_v28 }
 0xd7e   :  { %v700_v51 = vrot.slane %v698_v50, 5  ;;  %v848_v52 = vsel %vm847_vm7, %v846_v25, %v698_v50  ;;  %v1021_v50 = vld [vmem:[#allocation5 + $0xa8] sm:$0xff] }
 0xd7f   :  { %1039 = vmatpush.msrb.mxu2 %v1021_v50 }
 0xd80   :  { %701 = vrot.lane.b32.xlu2 %v700_v51, %s1313_s1 }
 0xdda   :  { %v702_v54 = vpop.permute.xlu2 %701 }
 0xddb   :  { %1117 = vmatmul.msk.f32.vlgmr.msra.gmra.mxu0 %vm207_vm4, %v702_v54  ;;  %v1019_v54 = vld [vmem:[#allocation5 + $0x98] sm:$0xff] }
 0xe58   :  { %v722_v56 = vpop.f32.mrf.mxu0 }
 0xe59   :  { %v726_v58 = vrot.slane %v722_v56, 2  ;;  %v892_v56 = vld [vmem:[#allocation5 + $0x78] sm:$0xff] }
 0xe5a   :  { %915 = vmatpush.msra.mxu3 %v892_v56 }
 0xe5b   :  { %v728_v59 = vadd.f32 %v726_v58, %v1383_v30  ;;  %v891_v58 = vld [vmem:[#allocation5 + $0x70] sm:$0xff] }
 0xe5c   :  { %916 = vmatpush.msra.mxu3 %v891_v58 }
 0xe5d   :  { %1205 = vtanh.f32 %v728_v59  ;;  %v1118_v62 = vmul.f32 -1.442695, %v728_v59 }
 0xe5f   :  { %1207 = vpow2.f32 %v1118_v62  ;;  %v1148_v62 = vld [vmem:[#allocation5 + $0x3] ss:$0 sm:$0xff] }
 0xe63   :  { %v1206_v60 = vpop.eup %1205 }
 0xe64   :  { %754 = vrot.lane.b32.xlu0 %v1206_v60, %s1312_s0  ;;  %v878_v60 = vperm.slane %v1469_v24, 0  ;;  %v1149_v24 = vld [vmem:[#allocation5 + $0x5] ss:$0 sm:$0xff] }
 0xe65   :  { %v1208_v63 = vpop.eup %1207 }
 0xe66   :  { %v732_v2 = vadd.f32 1.0, %v1208_v63 }
 0xe68   :  { %1209 = vrcp.f32 %v732_v2  ;;  %v744_v3 = vand.u32 2147483648, %v732_v2  ;;  %vm738_vm9 = vweird.f32 %v732_v2  ;;  %v742_v5 = vand.u32 2147483647, %v732_v2 }
 0xe6a   :  { %v745_v8 = vor.u32 1.1754944e-38, %v744_v3  ;;  %vm743_vm11 = vcmp.eq.f32.partialorder %v742_v5, 8.507059e+37  ;;  %v951_v3 = vld [vmem:[#allocation5 + $0x90] sm:$0xff] }
 0xe6b   :  { %971 = vmatpush.msrb.mxu1 %v951_v3 }
 0xe6e   :  { %v1210_v4 = vpop.eup %1209 }
 0xe6f   :  { %v734_v6 = vmul.f32 %v1210_v4, %v732_v2  ;;  %vm739_vm8 = vweird.f32 %v1210_v4 }
 0xe70   :  { %vm740_vm10 = vmor %vm738_vm9, %vm739_vm8 }
 0xe71   :  { %v735_v0 = vsub.f32 1.0, %v734_v6 }
 0xe73   :  { %v736_v1 = vmul.f32 %v1210_v4, %v735_v0 }
 0xe75   :  { %v737_v57 = vadd.f32 %v1210_v4, %v736_v1  ;;  %v922_v1 = vld [vmem:[#allocation5 + $0x80] sm:$0xff] }
 0xe76   :  { %944 = vmatpush.msrb.mxu0 %v922_v1 }
 0xe77   :  { %v741_v7 = vsel %vm740_vm10, %v1210_v4, %v737_v57 }
 0xe78   :  { %v746_v10 = vsel %vm743_vm11, %v745_v8, %v741_v7 }
 0xe79   :  { %v752_v14 = vmul.f32 %v750_v13, %v746_v10 }
 0xed6   :  { %v755_v9 = vpop.permute.xlu0 %754 }
 0xed7   :  { %v757_v11 = vmul.f32 %v755_v9, %v746_v10  ;;  %v950_v9 = vld [vmem:[#allocation5 + $0x88] sm:$0xff] }
 0xed8   :  { %972 = vmatpush.msrb.mxu1 %v950_v9 }
 0xed9   :  { %759 = vrot.lane.b32.xlu1 %v757_v11, %s1312_s0 }
 0xf4b   :  { %v760_v36 = vpop.permute.xlu1 %759 }
 0xf4c   :  { %v762_v15 = vadd.f32 %v760_v36, %v752_v14  ;;  %v1151_v36 = vld [vmem:[#allocation5 + $0x7] ss:$0 sm:$0xff] }
 0xf4e   :  { %1211 = vtanh.f32 %v762_v15  ;;  %v820_v41 = vrot.slane %v762_v15, 7 }
 0xf54   :  { %v1212_v16 = vpop.eup %1211 }
 0xf55   :  { %765 = vrot.lane.b32.xlu2 %v1212_v16, %s1312_s0 }
 0xfaf   :  { %v766_v18 = vpop.permute.xlu2 %765 }
 0xfb0   :  { %v768_v20 = vmul.f32 %v766_v18, %v746_v10  ;;  %v1150_v10 = vld [vmem:[#allocation5 + $0x6] ss:$0 sm:$0xff] }
 0xfb2   :  { %v770_v55 = vrot.slane %v768_v20, 6  ;;  %v850_v21 = vsel %vm849_vm12, %v848_v52, %v768_v20  ;;  %v1020_v52 = vld [vmem:[#allocation5 + $0xa0] sm:$0xff] }
 0xfb3   :  { %1040 = vmatpush.msrb.mxu2 %v1020_v52 }
 0xfb4   :  { %771 = vrot.lane.b32.xlu0 %v770_v55, %s1313_s1 }
 0xfb5   :  { %1041 = vmatpush.msrb.mxu2 %v1019_v54 }
0x1026   :  { %v772_v22 = vpop.permute.xlu0 %771 }
0x1027   :  { %1119 = vmatmul.msk.f32.vlgmr.msra.gmra.mxu1 %vm207_vm4, %v772_v22 }
0x10a4   :  { %v792_v23 = vpop.f32.mrf.mxu1 }
0x10a5   :  { %v796_v25 = vrot.slane %v792_v23, 1 }
0x10a7   :  { %v798_v26 = vadd.f32 %v796_v25, %v1383_v30 }
0x10a9   :  { %1213 = vtanh.f32 %v798_v26  ;;  %v1120_v29 = vmul.f32 -1.442695, %v798_v26 }
0x10ab   :  { %1215 = vpow2.f32 %v1120_v29 }
0x10af   :  { %v1214_v27 = vpop.eup %1213 }
0x10b0   :  { %824 = vrot.lane.b32.xlu1 %v1214_v27, %s1312_s0 }
0x10b1   :  { %v1216_v17 = vpop.eup %1215 }
0x10b2   :  { %v802_v31 = vadd.f32 1.0, %v1216_v17 }
0x10b4   :  { %1217 = vrcp.f32 %v802_v31  ;;  %v814_v37 = vand.u32 2147483648, %v802_v31  ;;  %vm808_vm14 = vweird.f32 %v802_v31  ;;  %v812_v53 = vand.u32 2147483647, %v802_v31 }
0x10b6   :  { %v815_v19 = vor.u32 1.1754944e-38, %v814_v37  ;;  %vm813_vm0 = vcmp.eq.f32.partialorder %v812_v53, 8.507059e+37 }
0x10ba   :  { %v1218_v32 = vpop.eup %1217 }
0x10bb   :  { %v804_v33 = vmul.f32 %v1218_v32, %v802_v31  ;;  %vm809_vm13 = vweird.f32 %v1218_v32 }
0x10bc   :  { %vm810_vm15 = vmor %vm808_vm14, %vm809_vm13 }
0x10bd   :  { %v805_v34 = vsub.f32 1.0, %v804_v33 }
0x10bf   :  { %v806_v35 = vmul.f32 %v1218_v32, %v805_v34 }
0x10c1   :  { %v807_v12 = vadd.f32 %v1218_v32, %v806_v35 }
0x10c3   :  { %v811_v30 = vsel %vm810_vm15, %v1218_v32, %v807_v12 }
0x10c4   :  { %v816_v39 = vsel %vm813_vm0, %v815_v19, %v811_v30 }
0x10c5   :  { %v822_v42 = vmul.f32 %v820_v41, %v816_v39 }
0x1122   :  { %v825_v38 = vpop.permute.xlu1 %824 }
0x1123   :  { %v827_v40 = vmul.f32 %v825_v38, %v816_v39 }
0x1125   :  { %829 = vrot.lane.b32.xlu2 %v827_v40, %s1312_s0 }
0x112d   :  { %886 = vrot.lane.b32.xlu2 %v1147_v49, %s1312_s0 }
0x117f   :  { %v830_v43 = vpop.permute.xlu2 %829 }
0x1180   :  { %v832_v44 = vadd.f32 %v830_v43, %v822_v42 }
0x1182   :  { %1219 = vtanh.f32 %v832_v44 }
0x1187   :  { %v887_v59 = vpop.permute.xlu2 %886 }
0x1188   :  { %v1220_v45 = vpop.eup %1219 }
0x1189   :  { %835 = vrot.lane.b32.xlu0 %v1220_v45, %s1312_s0 }
0x11fb   :  { %v836_v46 = vpop.permute.xlu0 %835 }
0x11fc   :  { %v838_v47 = vmul.f32 %v836_v46, %v816_v39 }
0x11fe   :  { %v1509_v48 = vsel %vm851_vm1, %v850_v21, %v838_v47  ;;  %v1152_v47 = vld [vmem:[#allocation5 + $0x8] ss:$0 sm:$0xff] }
0x11ff   :  { %854 = vrot.lane.b32.xlu1 %v1509_v48, %s1313_s1 }
0x1271   :  { %v855_v51 = vpop.permute.xlu1 %854 }
0x1272   :  { %1121 = vmatmul.msk.f32.vlgmr.msra.gmra.mxu2 %vm207_vm4, %v855_v51  ;;  %v1076_v51 = vsel %vm207_vm4, %v1460_v61, 0.0 }
0x1273   :  { %v1077_v58 = vsel %vm839_vm5, %v1076_v51, 0.0 }
0x1274   :  { %1079 = vst [vmem:[#allocation7 + $0x8] sm:$0xff] %v1077_v58 }
0x12f5   :  { %v875_v63 = vpop.f32.mrf.mxu2 }
0x12f6   :  { %v879_v2 = vadd.f32 %v878_v60, %v875_v63  ;;  %v889_v4 = vadd.f32 %v887_v59, %v875_v63 }
0x12f8   :  { %v1516_v6 = vadd.f32 %v1148_v62, %v879_v2  ;;  %v890_v0 = vmax.f32 %v889_v4, 0.0 }
0x12fa   :  { %896 = vrot.lane.b32.xlu0 %v890_v0, %s1321_s21  ;;  %1126 = vmatmul.msk.f32.vlgmr.msrb.gmra.mxu2 %vm207_vm4, %v1516_v6 }
0x136c   :  { %v897_v57 = vpop.permute.xlu0 %896 }
0x136d   :  { %1122 = vmatmul.msk.f32.vlgmr.msra.gmra.mxu3 %vm898_vm2, %v897_v57 }
0x137d   :  { %v1043_v42 = vpop.f32.mrf.mxu2 }
0x13f0   :  { %v918_v5 = vpop.f32.mrf.mxu3 }
0x13f1   :  { %v919_v7 = vadd.f32 %v1149_v24, %v918_v5 }
0x13f3   :  { %v921_v8 = vmax.f32 %v919_v7, 0.0 }
0x13f5   :  { %1123 = vmatmul.msk.f32.vlgmr.msrb.gmra.mxu0 %vm925_vm3, %v921_v8 }
0x1472   :  { %v946_v11 = vpop.f32.mrf.mxu0 }
0x1473   :  { %v947_v13 = vadd.f32 %v1150_v10, %v946_v11 }
0x1475   :  { %v949_v14 = vmax.f32 %v947_v13, 0.0 }
0x1477   :  { %1124 = vmatmul.msk.f32.vlgmr.msrb.gmra.mxu1 %vm898_vm2, %v949_v14 }
0x14f4   :  { %v974_v15 = vpop.f32.mrf.mxu1 }
0x14f5   :  { %v975_v16 = vadd.f32 %v1151_v36, %v974_v15 }
0x14f7   :  { %v1125_v18 = vmul.f32 -1.442695, %v975_v16 }
0x14f9   :  { %1221 = vpow2.f32 %v1125_v18 }
0x14ff   :  { %v1222_v20 = vpop.eup %1221 }
0x1500   :  { %v980_v55 = vadd.f32 1.0, %v1222_v20 }
0x1502   :  { %1223 = vrcp.f32 %v980_v55  ;;  %v992_v25 = vand.u32 2147483648, %v980_v55  ;;  %v990_v27 = vand.u32 2147483647, %v980_v55  ;;  %vm986_vm7 = vweird.f32 %v980_v55 }
0x1503   :  { %1225 = vtanh.f32 %v1043_v42 }
0x1504   :  { %v993_v17 = vor.u32 1.1754944e-38, %v992_v25  ;;  %vm991_vm9 = vcmp.eq.f32.partialorder %v990_v27, 8.507059e+37 }
0x1508   :  { %v1224_v21 = vpop.eup %1223 }
0x1509   :  { %v982_v22 = vmul.f32 %v1224_v21, %v980_v55  ;;  %vm987_vm6 = vweird.f32 %v1224_v21  ;;  %v1226_v43 = vpop.eup %1225 }
0x150a   :  { %vm988_vm8 = vmor %vm986_vm7, %vm987_vm6  ;;  %v1047_v44 = vmul.f32 0.1, %v1226_v43 }
0x150b   :  { %v983_v23 = vsub.f32 1.0, %v982_v22 }
0x150d   :  { %v984_v26 = vmul.f32 %v1224_v21, %v983_v23 }
0x150f   :  { %v985_v29 = vadd.f32 %v1224_v21, %v984_v26 }
0x1511   :  { %v989_v31 = vsel %vm988_vm8, %v1224_v21, %v985_v29 }
0x1512   :  { %v994_v32 = vsel %vm991_vm9, %v993_v17, %v989_v31 }
0x1513   :  { %997 = vrot.lane.b32.xlu1 %v994_v32, %s1313_s1 }
0x1585   :  { %v998_v33 = vpop.permute.xlu1 %997 }
0x1586   :  { %v1000_v34 = vsub.f32 %v1509_v48, %v998_v33  ;;  %v1048_v48 = vadd.f32 %v1047_v44, %v1516_v6 }
0x1588   :  { %v1001_v35 = vmul.f32 %v1000_v34, %v1000_v34 }
0x158a   :  { %1003 = vrot.lane.b32.xlu2 %v1001_v35, %s1313_s1 }
0x15e4   :  { %v1004_v12 = vpop.permute.xlu2 %1003 }
0x15e5   :  { %v1006_v37 = vsel %vm207_vm4, %v1004_v12, 0.0 }
0x15e6   :  { %1007 = vadd.xlane.f32.xlu0 %v1006_v37 }
0x1659   :  { %v1008_v53 = vpop.xlane.xlu0 %1007 }
0x165a   :  { %v1009_v30 = vrot.slane %v1008_v53, 4 }
0x165c   :  { %v1010_v19 = vadd.f32 %v1009_v30, %v1008_v53 }
0x165e   :  { %v1011_v38 = vrot.slane %v1010_v19, 2 }
0x1660   :  { %v1012_v39 = vadd.f32 %v1011_v38, %v1010_v19 }
0x1662   :  { %v1013_v40 = vrot.slane %v1012_v39, 1 }
0x1664   :  { %v1014_v41 = vadd.f32 %v1013_v40, %v1012_v39 }
0x1666   :  { %1127 = vpush %v1014_v41 }
0x1697   :  { %s1128_s22 = spop %1127 }
0x1698   :  { %v1016_v45 = vstv %s1128_s22 }
0x1699   :  { %v1017_v46 = vmul.f32 0.00390625, %v1016_v45 }
0x169b   :  { %vm1018_vm10 = vcmp.gt.f32.partialorder %v1017_v46, 0.05 }
0x169c   :  { %v1051_v49 = vsel %vm1018_vm10, %v1048_v48, %v1516_v6 }
0x169d   :  { %v1054_v28 = vmul.f32 %v1152_v47, %v1051_v49 }
0x169f   :  { %v1055_v50 = vmul.f32 %v1054_v28, %v1054_v28 }
0x16a1   :  { %v1056_v52 = vsel %vm207_vm4, %v1055_v50, 0.0 }
0x16a2   :  { %v1057_v54 = vrot.slane %v1056_v52, 4 }
0x16a4   :  { %v1058_v56 = vadd.f32 %v1057_v54, %v1056_v52 }
0x16a6   :  { %v1059_v59 = vrot.slane %v1058_v56, 2 }
0x16a8   :  { %v1060_v60 = vadd.f32 %v1059_v59, %v1058_v56 }
0x16aa   :  { %v1061_v62 = vrot.slane %v1060_v60, 1 }
0x16ac   :  { %v1062_v63 = vadd.f32 %v1061_v62, %v1060_v60 }
0x16ae   :  { %v1063_v2 = vmax.f32 %v1062_v63, 1e-24 }
0x16b0   :  { %1227 = vrsqrt.f32 %v1063_v2  ;;  %vm1070_vm12 = vweird.f32 %v1063_v2 }
0x16b6   :  { %v1228_v4 = vpop.eup %1227 }
0x16b7   :  { %v1065_v6 = vmul.f32 %v1228_v4, %v1063_v2  ;;  %vm1071_vm11 = vweird.f32 %v1228_v4 }
0x16b8   :  { %vm1072_vm13 = vmor %vm1070_vm12, %vm1071_vm11 }
0x16b9   :  { %v1066_v0 = vmul.f32 %v1228_v4, %v1065_v6 }
0x16bb   :  { %v1067_v1 = vmul.f32 0.5, %v1066_v0 }
0x16bd   :  { %v1068_v57 = vsub.f32 1.5, %v1067_v1 }
0x16bf   :  { %v1069_v61 = vmul.f32 %v1228_v4, %v1068_v57 }
0x16c1   :  { %v1073_v3 = vsel %vm1072_vm13, %v1228_v4, %v1069_v61 }
0x16c2   :  { %v1074_v24 = vmul.f32 %v1073_v3, %v1054_v28 }
0x16c4   :  { %v1075_v5 = vsel %vm207_vm4, %v1074_v24, 0.0 }
0x16c5   :  { %1078 = vst [vmem:[#allocation7] sm:$0xff] %v1075_v5 }
0x16c6   :  { %1092 = dma.vmem_to_hbm [thread:$0]  %s1085_s24, 256, %s1087_s27, [#allocation4], %s1308_s17, %s1308_s17, %s1309_s18  }
0x16c7   :  { %1305 = dma.done.wait [#allocation4], 256  }
0x16c8   :  { %1306 = vsyncadd [#allocation4], 4294967040 }
0x16c9   :  { %1097 = vsyncpa [#allocation3], 1 }
0x16ca   :  { %1098 = vsyncpa [#allocation6], 1 }
0x16cb   :  { %1099 = vsyncpa [#allocation4], 1 }

</bundles_post_ra>
